<compile_context>
chip_gen: v7x
topology: tpu7x:2x2x1
jax: 0.10.0
libtpu: 0.0.40
codegen_flags: <defaults>
</compile_context>

<pallas_src>
import math

import jax
import jax.numpy as jnp
from jax.experimental import pallas as pl
from jax.experimental.pallas import tpu as pltpu


# ----------------------------------------------------------------------------
# Pallas kernel: per-edge-tile attention logits (edges on the lane axis)
# ----------------------------------------------------------------------------
def _att_logits_kernel(xi_ref, ps_ref, xj_ref, pn_ref, conn_ref, mu_ref,
                       tsT_ref, tnT_ref, o_ref):
    # Per edge tile TE:
    #   xi_ref  : (JMP, TE)  gathered x[edge_index[0]]  (channel*irrep rows, zero-padded)
    #   ps_ref  : (FsR, TE)  flattened self precompute
    #   xj_ref  : (JMP, TE)  gathered x[edge_index[1]]  (un-rotated)
    #   pn_ref  : (FnR, TE)  flattened neighbor precompute
    #   conn_ref: (1,   TE)  parallel-transport angle
    #   mu_ref  : (JMP, 1)   rotation order of each row (constant, resident)
    #   tsT_ref : (IN, FsR*JMP)    folded self transform (pre-scaled by 1/sqrt(d_k)), bf16
    #   tnT_ref : (IN, 2*FnR*JMP)  [neighbor | rotated-neighbor] transform, bf16
    #   o_ref   : (H,  TE)   attention logits (pre-softmax), lane-dense store
    xi = xi_ref[...]
    xj = xj_ref[...]
    ps = ps_ref[...]
    pn = pn_ref[...]

    # fused rep_act (split form): only per-edge cos/sin scalings are needed here;
    # the pair-swap half of the rotation is folded into the second half of tnT.
    ang = mu_ref[...] * conn_ref[...]            # (JMP, TE)
    xc = jnp.cos(ang) * xj                       # EUP + VPU
    xs = jnp.sin(ang) * xj

    def kron_rows(p, xf):
        # rows (f*JMP + q, e) = p[f, e] * xf[q, e]   (sublane-aligned concat)
        return jnp.concatenate([xf * p[f:f + 1, :] for f in range(p.shape[0])], axis=0)

    tsT = tsT_ref[...]
    tnT = tnT_ref[...]
    cd = tsT.dtype

    xps_s = kron_rows(ps, xi).astype(cd)                                   # (FsR*JMP, TE)
    xps_n = jnp.concatenate([kron_rows(pn, xc), kron_rows(pn, xs)],
                            axis=0).astype(cd)                             # (2*FnR*JMP, TE)

    # single large-K matmul per operand, f32 accumulation on the MXU
    y_src = jnp.dot(tsT, xps_s, preferred_element_type=jnp.float32)        # (IN, TE)
    y_dst = jnp.dot(tnT, xps_n, preferred_element_type=jnp.float32)        # (IN, TE)

    prod = y_src * y_dst        # (IN, TE); 1/sqrt(d_k) already folded into tsT

    n_heads = o_ref.shape[0]
    d_k = prod.shape[0] // n_heads
    for h in range(n_heads):    # per-head reduction: sum d_k sublane rows (no MXU)
        o_ref[h:h + 1, :] = jnp.sum(prod[h * d_k:(h + 1) * d_k, :],
                                    axis=0, keepdims=True)


def eman_attention_logits(xi_slab, ps_slab, xj_slab, pn_slab, conn_slab, mu_col,
                          tsT, tnT_cat, *, n_heads, tile_e=512):
    """Pallas call computing logits[e, h] = <y_src, y_dst>_head / sqrt(d_k)."""
    jmp, E = xi_slab.shape
    fsr = ps_slab.shape[0]
    fnr = pn_slab.shape[0]
    assert tile_e % 128 == 0, "tile_e must be lane-aligned (multiple of 128)"

    # pad the edge axis up to a tile multiple; padded lanes produce logit 0 and are
    # sliced off before the segment softmax, so they never leak into a segment.
    e_pad = pl.cdiv(E, tile_e) * tile_e
    pad = e_pad - E
    if pad:
        padf = lambda a: jnp.pad(a, ((0, 0), (0, pad)))
        xi_slab, ps_slab, xj_slab, pn_slab, conn_slab = map(
            padf, (xi_slab, ps_slab, xj_slab, pn_slab, conn_slab))

    grid = (e_pad // tile_e,)
    edge_spec = lambda rows: pl.BlockSpec((rows, tile_e), lambda i: (0, i))
    const_spec = lambda shape: pl.BlockSpec(shape, lambda i: (0, 0))

    out = pl.pallas_call(
        _att_logits_kernel,
        out_shape=jax.ShapeDtypeStruct((n_heads, e_pad), jnp.float32),
        grid_spec=pltpu.PrefetchScalarGridSpec(
            num_scalar_prefetch=0,
            grid=grid,
            in_specs=[
                edge_spec(jmp),            # xi
                edge_spec(fsr),            # precomp_self
                edge_spec(jmp),            # xj (un-rotated)
                edge_spec(fnr),            # precomp (neighbor)
                edge_spec(1),              # connection
                const_spec(mu_col.shape),  # per-row irrep order (resident)
                const_spec(tsT.shape),     # folded self transform (resident)
                const_spec(tnT_cat.shape), # folded neighbor transform (resident)
            ],
            out_specs=pl.BlockSpec((n_heads, tile_e), lambda i: (0, i)),
        ),
        compiler_params=pltpu.CompilerParams(dimension_semantics=("parallel",)),
    )(xi_slab, ps_slab, xj_slab, pn_slab, conn_slab, mu_col, tsT, tnT_cat)
    return out.T[:E]                          # (E, n_heads)


# ----------------------------------------------------------------------------
# Offline transform folding / layout helpers (plain JAX, cheap)
# ----------------------------------------------------------------------------
def _edge_feature_slab(x_e, jm_pad):
    """(E, C, M) -> (jm_pad, E) with channel*irrep rows zero-padded to jm_pad."""
    E = x_e.shape[0]
    flat = x_e.reshape(E, -1).T
    jm = flat.shape[0]
    if jm_pad > jm:
        flat = jnp.pad(flat, ((0, jm_pad - jm), (0, 0)))
    return flat


def _fold_transform_3d(basis_kernel, weight, jm_pad):
    """T[(f,r), (j,m)->jm_pad, (i,n)] = sum_b K[b,f,n,m] * W[b,r,i,j]   (f32)."""
    B, F, Nrep, M = basis_kernel.shape
    _, R, I, J = weight.shape
    t = jnp.einsum("bfnm,brij->frjmin", basis_kernel, weight,
                   precision=jax.lax.Precision.HIGHEST)
    t = t.reshape(F * R, J * M, I * Nrep)
    if jm_pad > J * M:
        t = jnp.pad(t, ((0, 0), (0, jm_pad - J * M), (0, 0)))
    return t                                   # (F*R, jm_pad, I*Nrep)


def _rotation_constants(c_in, in_order, jm_pad):
    """Per-row irrep order column, and the (perm, sign) of the (cos,sin) pair swap."""
    M = 2 * in_order + 1
    mu = [0.0] * jm_pad
    perm = list(range(jm_pad))
    sign = [0.0] * jm_pad
    for c in range(c_in):
        for o in range(1, in_order + 1):
            ra = c * M + 2 * o - 1             # 'a' (cos-like) component row
            rb = c * M + 2 * o                 # 'b' (sin-like) component row
            mu[ra] = mu[rb] = float(o)
            perm[ra], sign[ra] = rb, 1.0       # T_rot[:, ra] = +T[:, rb]
            perm[rb], sign[rb] = ra, -1.0      # T_rot[:, rb] = -T[:, ra]
    return (jnp.asarray(mu, jnp.float32).reshape(jm_pad, 1), tuple(perm),
            jnp.asarray(sign, jnp.float32))


def _build_transforms(self_kernel, self_weight, neigh_kernel, neigh_weight,
                      jm_pad, perm, sign, d_k):
    """Returns f32 (tsT, tnT_cat):
       tsT     : (IN, FsR*jm_pad)     self transform, pre-scaled by 1/sqrt(d_k)
       tnT_cat : (IN, 2*FnR*jm_pad)   [neighbor | rotated-neighbor] transform
    """
    ts3 = _fold_transform_3d(self_kernel, self_weight, jm_pad)     # (FsR, JMP, IN)
    tn3 = _fold_transform_3d(neigh_kernel, neigh_weight, jm_pad)   # (FnR, JMP, IN)
    tn3_rot = sign[None, :, None] * tn3[:, list(perm), :]          # exact +-row swap
    in_dim = ts3.shape[-1]
    tsT = ts3.reshape(-1, in_dim).T * (1.0 / math.sqrt(d_k))
    tnT = tn3.reshape(-1, in_dim).T
    tnT_rot = tn3_rot.reshape(-1, in_dim).T
    return tsT, jnp.concatenate([tnT, tnT_rot], axis=1)


# ----------------------------------------------------------------------------
# Plain-JAX glue (gathers, segment softmax / degree scatter)
# ----------------------------------------------------------------------------
def rep_act(x, theta, order):
    """Reference parallel-transport rotation (used only by the correctness check)."""
    # TODO(synk): exact rep_act source not provided; standard SO(2) irrep layout assumed.
    parts = [x[:, :, 0:1]]
    for mu in range(1, order + 1):
        c = jnp.cos(mu * theta)[:, None]
        s = jnp.sin(mu * theta)[:, None]
        a = x[:, :, 2 * mu - 1]
        b = x[:, :, 2 * mu]
        parts.append((c * a - s * b)[:, :, None])
        parts.append((s * a + c * b)[:, :, None])
    return jnp.concatenate(parts, axis=2)


def segment_softmax(logits, seg_ids, num_segments):
    seg_max = jax.ops.segment_max(logits, seg_ids, num_segments=num_segments)
    seg_max = jnp.where(jnp.isfinite(seg_max), seg_max, 0.0)
    e = jnp.exp(logits - seg_max[seg_ids])
    denom = jax.ops.segment_sum(e, seg_ids, num_segments=num_segments)
    return e / (denom[seg_ids] + 1e-16)


def eman_att_layer_forward(x, edge_index, precomp, precomp_self, connection, params, *,
                           in_order, out_order, n_rings, n_heads, tile_e=512,
                           compute_dtype=jnp.bfloat16):
    self_kernel = params["self_kernel"]      # (B_s, F_s, 2*out_order+1, 2*in_order+1)
    neigh_kernel = params["neigh_kernel"]    # (B_n, F_n, 2*out_order+1, 2*in_order+1)
    self_weight = params["self_weight"]      # (B_s, R, C_out, C_in)
    neigh_weight = params["neigh_weight"]    # (B_n, R, C_out, C_in)

    assert neigh_kernel.shape[1] <= precomp.shape[1], \
        "Neighbor Kernel set with higher band-limit than precompute"
    precomp = precomp[:, : neigh_kernel.shape[1]]

    N_nodes, C_in, M = x.shape
    C_out = self_weight.shape[2]
    Nrep = 2 * out_order + 1
    assert self_weight.shape[1] == n_rings and neigh_weight.shape[1] == n_rings
    assert (C_out * Nrep) % n_heads == 0, \
        "out_channels*(2*out_order+1) must be divisible by n_heads"
    d_k = C_out * Nrep // n_heads
    E = edge_index.shape[1]
    JM = C_in * M
    JMP = -(-JM // 8) * 8                     # pad channel*irrep rows to sublane multiple

    src = edge_index[0]                       # softmax segment / "self" side (spec: row 0)
    dst = edge_index[1]                       # transported ("neighbor") side

    # edge-gathered slabs with edges on the lane (last) axis
    xi_slab = _edge_feature_slab(x[src], JMP)                 # (JMP, E)
    xj_slab = _edge_feature_slab(x[dst], JMP)                 # (JMP, E) un-rotated
    ps_slab = precomp_self.reshape(E, -1).T                   # (Fs*R, E)
    pn_slab = precomp.reshape(E, -1).T                        # (Fn*R, E)
    conn_slab = connection.reshape(1, E)

    mu_col, perm, sign = _rotation_constants(C_in, in_order, JMP)
    tsT, tnT_cat = _build_transforms(self_kernel, self_weight,
                                     neigh_kernel, neigh_weight,
                                     JMP, perm, sign, d_k)

    logits = eman_attention_logits(
        xi_slab, ps_slab, xj_slab, pn_slab, conn_slab, mu_col,
        tsT.astype(compute_dtype), tnT_cat.astype(compute_dtype),
        n_heads=n_heads, tile_e=tile_e)                       # (E, H)

    # segment softmax over edges grouped by edge_index[0], scaled by node degree
    deg = jax.ops.segment_sum(jnp.ones((E,), jnp.float32), src,
                              num_segments=N_nodes)[src][:, None]
    attention = deg * segment_softmax(logits, src, N_nodes)
    return attention


# ----------------------------------------------------------------------------
# Pure-JAX references (correctness checks of the kernel path)
# ----------------------------------------------------------------------------
def _reference_logits_spec(x_i, ps, x_jt, pn, self_kernel, neigh_kernel,
                           self_weight, neigh_weight, n_heads, d_k):
    hp = jax.lax.Precision.HIGHEST
    y_dst = jnp.einsum("ejm,efr,bfnm,brij->ein", x_jt, pn, neigh_kernel, neigh_weight,
                       precision=hp)
    y_src = jnp.einsum("ejm,efr,bfnm,brij->ein", x_i, ps, self_kernel, self_weight,
                       precision=hp)
    E = x_i.shape[0]
    y_dst = y_dst.reshape(E, n_heads, -1)
    y_src = y_src.reshape(E, n_heads, -1)
    return jnp.sum(y_src * y_dst, axis=2) / math.sqrt(d_k)


def _folded_logits(xi_slab, ps_slab, xj_slab, pn_slab, theta_row, mu_col,
                   tsT, tnT_cat, n_heads, quant_dtype=None):
    """Plain-JAX mirror of the Pallas kernel math (folded T, split rotation)."""
    hp = jax.lax.Precision.HIGHEST

    def kron(p, xf):
        return jnp.concatenate([xf * p[f:f + 1, :] for f in range(p.shape[0])], axis=0)

    ang = mu_col * theta_row
    xc = jnp.cos(ang) * xj_slab
    xs_ = jnp.sin(ang) * xj_slab
    xps_s = kron(ps_slab, xi_slab)
    xps_n = jnp.concatenate([kron(pn_slab, xc), kron(pn_slab, xs_)], axis=0)
    if quant_dtype is not None:
        xps_s, xps_n, tsT, tnT_cat = (a.astype(quant_dtype).astype(jnp.float32)
                                      for a in (xps_s, xps_n, tsT, tnT_cat))
    y_src = jnp.dot(tsT, xps_s, precision=hp)
    y_dst = jnp.dot(tnT_cat, xps_n, precision=hp)
    prod = y_src * y_dst
    in_dim, E = prod.shape
    return prod.reshape(n_heads, in_dim // n_heads, E).sum(axis=1).T   # (E, H)


# ----------------------------------------------------------------------------
if __name__ == "__main__":
    key = jax.random.PRNGKey(0)

    # module hyper-parameters (small, consistent with __init__)
    in_channels, out_channels = 4, 4
    in_order, out_order = 1, 1
    n_rings, n_heads = 2, 2
    M = 2 * in_order + 1          # 3
    Nrep = 2 * out_order + 1      # 3
    d_k = out_channels * Nrep // n_heads

    # TODO(synk): build_kernel / build_self_kernel (equivariance-constrained bases)
    # are not provided; deterministic synthetic bases of the right rank are used.
    B_self, F_self = 3, 2
    B_neigh, F_neigh = 5, 4

    N_nodes, E = 64, 1024
    tile_e = 512                  # lane-aligned; E/tile_e = 2 parallel grid steps (v7x)
    ks = jax.random.split(key, 9)

    x = jax.random.normal(ks[0], (N_nodes, in_channels, M), jnp.float32)
    edge_index = jax.random.randint(ks[1], (2, E), 0, N_nodes, dtype=jnp.int32)
    precomp = jax.random.normal(ks[2], (E, F_neigh + 1, n_rings), jnp.float32)
    precomp_self = jax.random.normal(ks[3], (E, F_self, n_rings), jnp.float32)
    connection = jax.random.uniform(ks[4], (E,), jnp.float32, 0.0, 2.0 * math.pi)

    params = {
        "self_kernel": jax.random.normal(ks[5], (B_self, F_self, Nrep, M), jnp.float32),
        "neigh_kernel": jax.random.normal(ks[6], (B_neigh, F_neigh, Nrep, M), jnp.float32),
        "self_weight": 0.1 * jax.random.normal(
            ks[7], (B_self, n_rings, out_channels, in_channels), jnp.float32),
        "neigh_weight": 0.1 * jax.random.normal(
            ks[8], (B_neigh, n_rings, out_channels, in_channels), jnp.float32),
        # self_bias / neigh_bias exist in __init__ but are unused in this forward.
        "self_bias": jnp.zeros((out_channels,), jnp.float32),
        "neigh_bias": jnp.zeros((out_channels,), jnp.float32),
    }

    fwd = jax.jit(eman_att_layer_forward,
                  static_argnames=("in_order", "out_order", "n_rings", "n_heads",
                                   "tile_e", "compute_dtype"))
    attention = fwd(x, edge_index, precomp, precomp_self, connection, params,
                    in_order=in_order, out_order=out_order, n_rings=n_rings,
                    n_heads=n_heads, tile_e=tile_e)
    attention = jax.block_until_ready(attention)
    assert attention.shape == (E, n_heads)

    # ------------------------ correctness checks ------------------------
    src = edge_index[0]
    x_i = x[src]
    x_jt = rep_act(x[edge_index[1]], connection, in_order)
    pn = precomp[:, :F_neigh]
    JMP = -(-(in_channels * M) // 8) * 8

    mu_col, perm, sign = _rotation_constants(in_channels, in_order, JMP)
    tsT, tnT_cat = _build_transforms(params["self_kernel"], params["self_weight"],
                                     params["neigh_kernel"], params["neigh_weight"],
                                     JMP, perm, sign, d_k)
    xi_slab = _edge_feature_slab(x_i, JMP)
    xj_slab = _edge_feature_slab(x[edge_index[1]], JMP)
    ps_slab = precomp_self.reshape(E, -1).T
    pn_slab = pn.reshape(E, -1).T
    theta_row = connection.reshape(1, E)

    # (1) algebra check (f32): folded-T + split-rotation path == spec einsum + rep_act
    logits_spec = _reference_logits_spec(
        x_i, precomp_self, x_jt, pn,
        params["self_kernel"], params["neigh_kernel"],
        params["self_weight"], params["neigh_weight"], n_heads, d_k)
    logits_fold = _folded_logits(xi_slab, ps_slab, xj_slab, pn_slab, theta_row, mu_col,
                                 tsT, tnT_cat, n_heads)
    assert jnp.allclose(logits_spec, logits_fold, atol=1e-3, rtol=1e-3), \
        float(jnp.max(jnp.abs(logits_spec - logits_fold)))

    # (2) Pallas kernel vs a plain-JAX mirror of the same bf16-quantized math
    logits_q = _folded_logits(xi_slab, ps_slab, xj_slab, pn_slab, theta_row, mu_col,
                              tsT, tnT_cat, n_heads, quant_dtype=jnp.bfloat16)
    deg = jax.ops.segment_sum(jnp.ones((E,), jnp.float32), src,
                              num_segments=N_nodes)[src][:, None]
    ref_att = deg * segment_softmax(logits_q, src, N_nodes)
    assert jnp.allclose(attention, ref_att, atol=5e-3, rtol=5e-3), \
        float(jnp.max(jnp.abs(attention - ref_att)))

    print("KERNEL_OK")
</pallas_src>

<mosaic_0001>
module attributes {stable_mosaic.version = 11 : i64} {
  func.func private @main(%arg0: i32) attributes {dimension_semantics = [#tpu.dimension_semantics<core_parallel>], iteration_bounds = array<i64: 2>, tpu.core_type = #tpu.core_type<sc_scalar_subcore>, window_params = []} {
    return
  }
}

module attributes {stable_mosaic.version = 11 : i64} {
  func.func private @main(%arg0: i32) attributes {dimension_semantics = [#tpu.dimension_semantics<core_parallel>], iteration_bounds = array<i64: 2>, tpu.core_type = #tpu.core_type<sc_scalar_subcore>, window_params = []} {
    return
  }
}

module attributes {stable_mosaic.version = 11 : i64} {
  func.func @_att_logits_kernel(%arg0: i32, %arg1: memref<16x512xf32, #tpu.memory_space<vmem>>, %arg2: memref<4x512xf32, #tpu.memory_space<vmem>>, %arg3: memref<16x512xf32, #tpu.memory_space<vmem>>, %arg4: memref<8x512xf32, #tpu.memory_space<vmem>>, %arg5: memref<1x512xf32, #tpu.memory_space<vmem>>, %arg6: memref<16x1xf32, #tpu.memory_space<vmem>>, %arg7: memref<12x64xbf16, #tpu.memory_space<vmem>>, %arg8: memref<12x256xbf16, #tpu.memory_space<vmem>>, %arg9: memref<2x512xf32, #tpu.memory_space<vmem>>) attributes {dimension_semantics = [#tpu.dimension_semantics<parallel>], iteration_bounds = array<i64: 2>, scalar_prefetch = 0 : i64, scratch_operands = 0 : i64, tpu.core_type = #tpu.core_type<tc>, window_params = [{transform_indices = @transform_0, window_bounds = array<i64: 16, 512>}, {transform_indices = @transform_1, window_bounds = array<i64: 4, 512>}, {transform_indices = @transform_2, window_bounds = array<i64: 16, 512>}, {transform_indices = @transform_3, window_bounds = array<i64: 8, 512>}, {transform_indices = @transform_4, window_bounds = array<i64: 1, 512>}, {pipeline_mode = #tpu.pipeline_mode<synchronous>, transform_indices = @transform_5, window_bounds = array<i64: 16, 1>}, {pipeline_mode = #tpu.pipeline_mode<synchronous>, transform_indices = @transform_6, window_bounds = array<i64: 12, 64>}, {pipeline_mode = #tpu.pipeline_mode<synchronous>, transform_indices = @transform_7, window_bounds = array<i64: 12, 256>}, {transform_indices = @transform_8, window_bounds = array<i64: 2, 512>}]} {
    %c0 = arith.constant 0 : index
    %c0_0 = arith.constant 0 : index
    %0 = vector.load %arg1[%c0, %c0_0] : memref<16x512xf32, #tpu.memory_space<vmem>>, vector<16x512xf32>
    %c0_1 = arith.constant 0 : index
    %c0_2 = arith.constant 0 : index
    %1 = vector.load %arg3[%c0_1, %c0_2] : memref<16x512xf32, #tpu.memory_space<vmem>>, vector<16x512xf32>
    %c0_3 = arith.constant 0 : index
    %c0_4 = arith.constant 0 : index
    %2 = vector.load %arg2[%c0_3, %c0_4] : memref<4x512xf32, #tpu.memory_space<vmem>>, vector<4x512xf32>
    %c0_5 = arith.constant 0 : index
    %c0_6 = arith.constant 0 : index
    %3 = vector.load %arg4[%c0_5, %c0_6] : memref<8x512xf32, #tpu.memory_space<vmem>>, vector<8x512xf32>
    %c0_7 = arith.constant 0 : index
    %c0_8 = arith.constant 0 : index
    %4 = vector.load %arg6[%c0_7, %c0_8] : memref<16x1xf32, #tpu.memory_space<vmem>>, vector<16x1xf32>
    %c0_9 = arith.constant 0 : index
    %c0_10 = arith.constant 0 : index
    %5 = vector.load %arg5[%c0_9, %c0_10] : memref<1x512xf32, #tpu.memory_space<vmem>>, vector<1x512xf32>
    %6 = vector.broadcast %4 : vector<16x1xf32> to vector<16x512xf32>
    %7 = vector.broadcast %5 : vector<1x512xf32> to vector<16x512xf32>
    %8 = arith.mulf %6, %7 : vector<16x512xf32>
    %9 = math.cos %8 : vector<16x512xf32>
    %10 = arith.mulf %9, %1 : vector<16x512xf32>
    %11 = math.sin %8 : vector<16x512xf32>
    %12 = arith.mulf %11, %1 : vector<16x512xf32>
    %c0_11 = arith.constant 0 : index
    %c0_12 = arith.constant 0 : index
    %13 = vector.load %arg7[%c0_11, %c0_12] : memref<12x64xbf16, #tpu.memory_space<vmem>>, vector<12x64xbf16>
    %c0_13 = arith.constant 0 : index
    %c0_14 = arith.constant 0 : index
    %14 = vector.load %arg8[%c0_13, %c0_14] : memref<12x256xbf16, #tpu.memory_space<vmem>>, vector<12x256xbf16>
    %15 = vector.extract_strided_slice %2 {offsets = [0, 0], sizes = [1, 512], strides = [1, 1]} : vector<4x512xf32> to vector<1x512xf32>
    %16 = vector.broadcast %15 : vector<1x512xf32> to vector<16x512xf32>
    %17 = arith.mulf %0, %16 : vector<16x512xf32>
    %18 = vector.extract_strided_slice %2 {offsets = [1, 0], sizes = [1, 512], strides = [1, 1]} : vector<4x512xf32> to vector<1x512xf32>
    %19 = vector.broadcast %18 : vector<1x512xf32> to vector<16x512xf32>
    %20 = arith.mulf %0, %19 : vector<16x512xf32>
    %21 = vector.extract_strided_slice %2 {offsets = [2, 0], sizes = [1, 512], strides = [1, 1]} : vector<4x512xf32> to vector<1x512xf32>
    %22 = vector.broadcast %21 : vector<1x512xf32> to vector<16x512xf32>
    %23 = arith.mulf %0, %22 : vector<16x512xf32>
    %24 = vector.extract_strided_slice %2 {offsets = [3, 0], sizes = [1, 512], strides = [1, 1]} : vector<4x512xf32> to vector<1x512xf32>
    %25 = vector.broadcast %24 : vector<1x512xf32> to vector<16x512xf32>
    %26 = arith.mulf %0, %25 : vector<16x512xf32>
    %27 = tpu.concatenate %17, %20, %23, %26 in 0 : vector<16x512xf32>, vector<16x512xf32>, vector<16x512xf32>, vector<16x512xf32> -> vector<64x512xf32>
    %28 = arith.truncf %27 : vector<64x512xf32> to vector<64x512xbf16>
    %29 = vector.extract_strided_slice %3 {offsets = [0, 0], sizes = [1, 512], strides = [1, 1]} : vector<8x512xf32> to vector<1x512xf32>
    %30 = vector.broadcast %29 : vector<1x512xf32> to vector<16x512xf32>
    %31 = arith.mulf %10, %30 : vector<16x512xf32>
    %32 = vector.extract_strided_slice %3 {offsets = [1, 0], sizes = [1, 512], strides = [1, 1]} : vector<8x512xf32> to vector<1x512xf32>
    %33 = vector.broadcast %32 : vector<1x512xf32> to vector<16x512xf32>
    %34 = arith.mulf %10, %33 : vector<16x512xf32>
    %35 = vector.extract_strided_slice %3 {offsets = [2, 0], sizes = [1, 512], strides = [1, 1]} : vector<8x512xf32> to vector<1x512xf32>
    %36 = vector.broadcast %35 : vector<1x512xf32> to vector<16x512xf32>
    %37 = arith.mulf %10, %36 : vector<16x512xf32>
    %38 = vector.extract_strided_slice %3 {offsets = [3, 0], sizes = [1, 512], strides = [1, 1]} : vector<8x512xf32> to vector<1x512xf32>
    %39 = vector.broadcast %38 : vector<1x512xf32> to vector<16x512xf32>
    %40 = arith.mulf %10, %39 : vector<16x512xf32>
    %41 = vector.extract_strided_slice %3 {offsets = [4, 0], sizes = [1, 512], strides = [1, 1]} : vector<8x512xf32> to vector<1x512xf32>
    %42 = vector.broadcast %41 : vector<1x512xf32> to vector<16x512xf32>
    %43 = arith.mulf %10, %42 : vector<16x512xf32>
    %44 = vector.extract_strided_slice %3 {offsets = [5, 0], sizes = [1, 512], strides = [1, 1]} : vector<8x512xf32> to vector<1x512xf32>
    %45 = vector.broadcast %44 : vector<1x512xf32> to vector<16x512xf32>
    %46 = arith.mulf %10, %45 : vector<16x512xf32>
    %47 = vector.extract_strided_slice %3 {offsets = [6, 0], sizes = [1, 512], strides = [1, 1]} : vector<8x512xf32> to vector<1x512xf32>
    %48 = vector.broadcast %47 : vector<1x512xf32> to vector<16x512xf32>
    %49 = arith.mulf %10, %48 : vector<16x512xf32>
    %50 = vector.extract_strided_slice %3 {offsets = [7, 0], sizes = [1, 512], strides = [1, 1]} : vector<8x512xf32> to vector<1x512xf32>
    %51 = vector.broadcast %50 : vector<1x512xf32> to vector<16x512xf32>
    %52 = arith.mulf %10, %51 : vector<16x512xf32>
    %53 = tpu.concatenate %31, %34, %37, %40, %43, %46, %49, %52 in 0 : vector<16x512xf32>, vector<16x512xf32>, vector<16x512xf32>, vector<16x512xf32>, vector<16x512xf32>, vector<16x512xf32>, vector<16x512xf32>, vector<16x512xf32> -> vector<128x512xf32>
    %54 = vector.extract_strided_slice %3 {offsets = [0, 0], sizes = [1, 512], strides = [1, 1]} : vector<8x512xf32> to vector<1x512xf32>
    %55 = vector.broadcast %54 : vector<1x512xf32> to vector<16x512xf32>
    %56 = arith.mulf %12, %55 : vector<16x512xf32>
    %57 = vector.extract_strided_slice %3 {offsets = [1, 0], sizes = [1, 512], strides = [1, 1]} : vector<8x512xf32> to vector<1x512xf32>
    %58 = vector.broadcast %57 : vector<1x512xf32> to vector<16x512xf32>
    %59 = arith.mulf %12, %58 : vector<16x512xf32>
    %60 = vector.extract_strided_slice %3 {offsets = [2, 0], sizes = [1, 512], strides = [1, 1]} : vector<8x512xf32> to vector<1x512xf32>
    %61 = vector.broadcast %60 : vector<1x512xf32> to vector<16x512xf32>
    %62 = arith.mulf %12, %61 : vector<16x512xf32>
    %63 = vector.extract_strided_slice %3 {offsets = [3, 0], sizes = [1, 512], strides = [1, 1]} : vector<8x512xf32> to vector<1x512xf32>
    %64 = vector.broadcast %63 : vector<1x512xf32> to vector<16x512xf32>
    %65 = arith.mulf %12, %64 : vector<16x512xf32>
    %66 = vector.extract_strided_slice %3 {offsets = [4, 0], sizes = [1, 512], strides = [1, 1]} : vector<8x512xf32> to vector<1x512xf32>
    %67 = vector.broadcast %66 : vector<1x512xf32> to vector<16x512xf32>
    %68 = arith.mulf %12, %67 : vector<16x512xf32>
    %69 = vector.extract_strided_slice %3 {offsets = [5, 0], sizes = [1, 512], strides = [1, 1]} : vector<8x512xf32> to vector<1x512xf32>
    %70 = vector.broadcast %69 : vector<1x512xf32> to vector<16x512xf32>
    %71 = arith.mulf %12, %70 : vector<16x512xf32>
    %72 = vector.extract_strided_slice %3 {offsets = [6, 0], sizes = [1, 512], strides = [1, 1]} : vector<8x512xf32> to vector<1x512xf32>
    %73 = vector.broadcast %72 : vector<1x512xf32> to vector<16x512xf32>
    %74 = arith.mulf %12, %73 : vector<16x512xf32>
    %75 = vector.extract_strided_slice %3 {offsets = [7, 0], sizes = [1, 512], strides = [1, 1]} : vector<8x512xf32> to vector<1x512xf32>
    %76 = vector.broadcast %75 : vector<1x512xf32> to vector<16x512xf32>
    %77 = arith.mulf %12, %76 : vector<16x512xf32>
    %78 = tpu.concatenate %56, %59, %62, %65, %68, %71, %74, %77 in 0 : vector<16x512xf32>, vector<16x512xf32>, vector<16x512xf32>, vector<16x512xf32>, vector<16x512xf32>, vector<16x512xf32>, vector<16x512xf32>, vector<16x512xf32> -> vector<128x512xf32>
    %79 = tpu.concatenate %53, %78 in 0 : vector<128x512xf32>, vector<128x512xf32> -> vector<256x512xf32>
    %80 = arith.truncf %79 : vector<256x512xf32> to vector<256x512xbf16>
    %cst = arith.constant dense<0.000000e+00> : vector<12x512xf32>
    %81 = tpu.matmul %13, %28, %cst {dimension_numbers = #tpu.dot_dimension_numbers<[1], [0], [0], [1], [0, 0, 1, 1], [], []>} : vector<12x64xbf16>, vector<64x512xbf16>, vector<12x512xf32> -> vector<12x512xf32>
    %cst_15 = arith.constant dense<0.000000e+00> : vector<12x512xf32>
    %82 = tpu.matmul %14, %80, %cst_15 {dimension_numbers = #tpu.dot_dimension_numbers<[1], [0], [0], [1], [0, 0, 1, 1], [], []>} : vector<12x256xbf16>, vector<256x512xbf16>, vector<12x512xf32> -> vector<12x512xf32>
    %83 = arith.mulf %81, %82 : vector<12x512xf32>
    %84 = vector.extract_strided_slice %83 {offsets = [0, 0], sizes = [6, 512], strides = [1, 1]} : vector<12x512xf32> to vector<6x512xf32>
    %cst_16 = arith.constant dense<0.000000e+00> : vector<512xf32>
    %85 = vector.multi_reduction <add>, %84, %cst_16 [0] : vector<6x512xf32> to vector<512xf32>
    %86 = vector.shape_cast %85 : vector<512xf32> to vector<1x512xf32>
    %c0_17 = arith.constant 0 : index
    %c0_18 = arith.constant 0 : index
    %87 = vector.load %arg9[%c0_17, %c0_18] : memref<2x512xf32, #tpu.memory_space<vmem>>, vector<1x512xf32>
    tpu.vector_store %arg9[%c0_17, %c0_18], %86 {strides = array<i32>} : memref<2x512xf32, #tpu.memory_space<vmem>>, vector<1x512xf32>,
    %88 = vector.extract_strided_slice %83 {offsets = [6, 0], sizes = [6, 512], strides = [1, 1]} : vector<12x512xf32> to vector<6x512xf32>
    %cst_19 = arith.constant dense<0.000000e+00> : vector<512xf32>
    %89 = vector.multi_reduction <add>, %88, %cst_19 [0] : vector<6x512xf32> to vector<512xf32>
    %90 = vector.shape_cast %89 : vector<512xf32> to vector<1x512xf32>
    %c1 = arith.constant 1 : index
    %c0_20 = arith.constant 0 : index
    %91 = vector.load %arg9[%c1, %c0_20] : memref<2x512xf32, #tpu.memory_space<vmem>>, vector<1x512xf32>
    tpu.vector_store %arg9[%c1, %c0_20], %90 {strides = array<i32>} : memref<2x512xf32, #tpu.memory_space<vmem>>, vector<1x512xf32>,
    return
  }
  func.func @transform_0(%arg0: i32) -> (i32, i32) {
    %c0_i32 = arith.constant 0 : i32
    %c0_i32_0 = arith.constant 0 : i32
    return %c0_i32, %arg0 : i32, i32
  }
  func.func @transform_1(%arg0: i32) -> (i32, i32) {
    %c0_i32 = arith.constant 0 : i32
    %c0_i32_0 = arith.constant 0 : i32
    return %c0_i32, %arg0 : i32, i32
  }
  func.func @transform_2(%arg0: i32) -> (i32, i32) {
    %c0_i32 = arith.constant 0 : i32
    %c0_i32_0 = arith.constant 0 : i32
    return %c0_i32, %arg0 : i32, i32
  }
  func.func @transform_3(%arg0: i32) -> (i32, i32) {
    %c0_i32 = arith.constant 0 : i32
    %c0_i32_0 = arith.constant 0 : i32
    return %c0_i32, %arg0 : i32, i32
  }
  func.func @transform_4(%arg0: i32) -> (i32, i32) {
    %c0_i32 = arith.constant 0 : i32
    %c0_i32_0 = arith.constant 0 : i32
    return %c0_i32, %arg0 : i32, i32
  }
  func.func @transform_5(%arg0: i32) -> (i32, i32) {
    %c0_i32 = arith.constant 0 : i32
    %c0_i32_0 = arith.constant 0 : i32
    %c0_i32_1 = arith.constant 0 : i32
    return %c0_i32, %c0_i32_0 : i32, i32
  }
  func.func @transform_6(%arg0: i32) -> (i32, i32) {
    %c0_i32 = arith.constant 0 : i32
    %c0_i32_0 = arith.constant 0 : i32
    %c0_i32_1 = arith.constant 0 : i32
    return %c0_i32, %c0_i32_0 : i32, i32
  }
  func.func @transform_7(%arg0: i32) -> (i32, i32) {
    %c0_i32 = arith.constant 0 : i32
    %c0_i32_0 = arith.constant 0 : i32
    %c0_i32_1 = arith.constant 0 : i32
    return %c0_i32, %c0_i32_0 : i32, i32
  }
  func.func @transform_8(%arg0: i32) -> (i32, i32) {
    %c0_i32 = arith.constant 0 : i32
    %c0_i32_0 = arith.constant 0 : i32
    return %c0_i32, %arg0 : i32, i32
  }
}

</mosaic_0001>

<bundles_post_ra>
// kernel: eman_att_layer_forward.1
= control target key start
LH: loop header
LB: loop body
LE: loop exit
PB: predicated region body
PF: predicated region fallthrough
CT: control target
= control target key end

     0   :  { %s3446_s27 = smov 0   ;;  %s3448_s28 = smov 0   ;;  %s5057_s0 = inlined_call_operand.vmem [shape: f32[16,1024], index: 0, kind: input, shape index: {}]   ;;  %s5058_s1 = inlined_call_operand.vmem [shape: f32[4,1024], index: 1, kind: input, shape index: {}]   ;;  %s5059_s2 = inlined_call_operand.vmem [shape: f32[16,1024], index: 2, kind: input, shape index: {}]   ;;  %s5060_s3 = inlined_call_operand.vmem [shape: f32[8,1024], index: 3, kind: input, shape index: {}]   ;;  %s5061_s4 = inlined_call_operand.vmem [shape: f32[1,1024], index: 4, kind: input, shape index: {}]   ;;  %s5062_s5 = inlined_call_operand.vmem [shape: f32[16,1], index: 5, kind: input, shape index: {}]   ;;  %s5063_s6 = inlined_call_operand.vmem [shape: bf16[12,64], index: 6, kind: input, shape index: {}]   ;;  %s5064_s7 = inlined_call_operand.vmem [shape: bf16[12,256], index: 7, kind: input, shape index: {}]   ;;  %s5065_s8 = inlined_call_operand.vmem [shape: f32[2,1024], index: 8, kind: output, shape index: {}]  }
   0x1   :  { %s3450_s29 = smov 0  }
   0x2 LB: > { %s3174_s30 = sadd.s32 4294967295, %s3391_s29   ;;  %s3463_s9 = sadd.s32 1, %s3391_s29   ;;  %s3391_s29 = sphi %s3450_s29, %s5181_s29   ;;  %s3387_s28 = sphi %s3448_s28, %s5180_s28   ;;  %s3383_s27 = sphi %s3446_s27, %s5179_s27  }
   0x3   : > { %s22_s10 = ssub.s32 %s3391_s29, %s3463_s9  ;;  %s25_s11 = sadd.s32 1, %s3387_s28 }
   0x4   : > { %p23_p0 = scmp.eq.s32.totalorder %s22_s10, 0  ;;  %p32_p1 = scmp.ne.s32.totalorder %s3387_s28, %s3383_s27 }
   0x5   : > { %p33_p2 = scmp.eq.s32.totalorder %s3391_s29, 0  ;;  %p3177_p4 = scmp.ge.s32.totalorder %s3391_s29, 2 }
   0x6   : > { %s3472_s12 = scalar_select %p23_p0, %s3387_s28, %s25_s11  }
   0x7   : > { %p3474_p3 = por %p33_p2, %p32_p1  ;;  %260 = sbr.rel (%p3177_p4) target bundleno = 30 (0x1e), region = 28 }
   0xe   : > { %263 = sbr.rel (!%p3474_p3) target bundleno = 22 (0x16), region = 32  ;;  %s265_s14 = sand.u32 (%p3474_p3), 1, %s3387_s28  }
   0xf   : > { %s3266_s15 = sshll.u32 (%p3474_p3), %s3391_s29, 5  ;;  %s3178_s16 = sshll.u32 (%p3474_p3), %s265_s14, 6 }
  0x10   : > { %s270_s19 = scalar_lea.vmem (%p3474_p3), %s5057_s0, %s3266_s15  ;;  %s267_s20 = scalar_lea.vmem (%p3474_p3), [#allocation2], %s3178_s16 }
  0x11   : > { %v283_v0 = vld [vmem:[%s270_s19] sm:$0xff] (%p3474_p3)  ;;  %v285_v1 = vld [vmem:[%s270_s19 + $0x8] sm:$0xff] (%p3474_p3)  ;;  %v287_v2 = vld [vmem:[%s270_s19 + $0x10] sm:$0xff] (%p3474_p3) }
  0x12   : > { %284 = vst [vmem:[%s267_s20] sm:$0xff] (%p3474_p3), %v283_v0  ;;  %286 = vst [vmem:[%s267_s20 + $0x8] sm:$0xff] (%p3474_p3), %v285_v1  ;;  %v289_v3 = vld [vmem:[%s270_s19 + $0x18] sm:$0xff] (%p3474_p3)  ;;  %v291_v4 = vld [vmem:[%s270_s19 + $0x40] sm:$0xff] (%p3474_p3) }
  0x13   : > { %288 = vst [vmem:[%s267_s20 + $0x10] sm:$0xff] (%p3474_p3), %v287_v2  ;;  %v293_v5 = vld [vmem:[%s270_s19 + $0x48] sm:$0xff] (%p3474_p3)  ;;  %290 = vst [vmem:[%s267_s20 + $0x18] sm:$0xff] (%p3474_p3), %v289_v3  ;;  %v295_v6 = vld [vmem:[%s270_s19 + $0x50] sm:$0xff] (%p3474_p3) }
  0x14   : > { %292 = vst [vmem:[%s267_s20 + $0x20] sm:$0xff] (%p3474_p3), %v291_v4  ;;  %294 = vst [vmem:[%s267_s20 + $0x28] sm:$0xff] (%p3474_p3), %v293_v5  ;;  %v297_v7 = vld [vmem:[%s270_s19 + $0x58] sm:$0xff] (%p3474_p3) }
  0x15   : > { %296 = vst [vmem:[%s267_s20 + $0x30] sm:$0xff] %v295_v6  ;;  %298 = vst [vmem:[%s267_s20 + $0x38] sm:$0xff] %v297_v7 }
  0x16 PF: > { %313 = sbr.rel (!%p3474_p3) target bundleno = 30 (0x1e), region = 59  ;;  %s315_s21 = sand.u32 (%p3474_p3), 1, %s3387_s28  }
  0x17   : > { %s3267_s22 = sshll.u32 (%p3474_p3), %s3391_s29, 5  ;;  %s3181_s23 = sshll.u32 (%p3474_p3), %s315_s21, 6 }
  0x18   : > { %s320_s26 = scalar_lea.vmem (%p3474_p3), %s5059_s2, %s3267_s22  ;;  %s317_s10 = scalar_lea.vmem (%p3474_p3), [#allocation3], %s3181_s23 }
  0x19   : > { %v333_v8 = vld [vmem:[%s320_s26] sm:$0xff] (%p3474_p3)  ;;  %v335_v9 = vld [vmem:[%s320_s26 + $0x8] sm:$0xff] (%p3474_p3)  ;;  %v337_v10 = vld [vmem:[%s320_s26 + $0x10] sm:$0xff] (%p3474_p3) }
  0x1a   : > { %334 = vst [vmem:[%s317_s10] sm:$0xff] (%p3474_p3), %v333_v8  ;;  %336 = vst [vmem:[%s317_s10 + $0x8] sm:$0xff] (%p3474_p3), %v335_v9  ;;  %v339_v11 = vld [vmem:[%s320_s26 + $0x18] sm:$0xff] (%p3474_p3)  ;;  %v341_v12 = vld [vmem:[%s320_s26 + $0x40] sm:$0xff] (%p3474_p3) }
  0x1b   : > { %338 = vst [vmem:[%s317_s10 + $0x10] sm:$0xff] (%p3474_p3), %v337_v10  ;;  %v343_v13 = vld [vmem:[%s320_s26 + $0x48] sm:$0xff] (%p3474_p3)  ;;  %340 = vst [vmem:[%s317_s10 + $0x18] sm:$0xff] (%p3474_p3), %v339_v11  ;;  %v345_v14 = vld [vmem:[%s320_s26 + $0x50] sm:$0xff] (%p3474_p3) }
  0x1c   : > { %342 = vst [vmem:[%s317_s10 + $0x20] sm:$0xff] (%p3474_p3), %v341_v12  ;;  %344 = vst [vmem:[%s317_s10 + $0x28] sm:$0xff] (%p3474_p3), %v343_v13  ;;  %v347_v15 = vld [vmem:[%s320_s26 + $0x58] sm:$0xff] (%p3474_p3) }
  0x1d   : > { %346 = vst [vmem:[%s317_s10 + $0x30] sm:$0xff] %v345_v14  ;;  %348 = vst [vmem:[%s317_s10 + $0x38] sm:$0xff] %v347_v15 }
  0x1e PF: > { %p3184_p5 = scmp.ge.s32.totalorder %s3391_s29, 1  ;;  %p370_p6 = scmp.lt.s32.totalorder %s3391_s29, 3 }
  0x20   : > { %p371_p7 = pnand %p3184_p5, %p370_p6 }
  0x22   : > { %374 = sbr.rel (%p371_p7) target bundleno = 742 (0x2e6), region = 90 }
  0x29   : > { %v483_v16 = vld [vmem:[%s5062_s5] sm:$0xff]  ;;  %v3393_v17 = vmov 0   ;;  %v484_v18 = vld [vmem:[%s5062_s5 + $0x8] sm:$0xff]  ;;  %s3187_s16 = sshll.u32 %s3174_s30, 2  ;;  %v5066_v19 = vlaneseq  ;;  %v5090_v60 = vmov 683565275  }
  0x2a   : > { %3332 = vset.pattern.permute.xlu0 %v3393_v17  ;;  %2756 = vmatprep.mubr.bf16.mxu0 %v3393_v17  ;;  %p437_p8 = scmp.lt.s32.totalorder %s3187_s16, 7  ;;  %v5082_v0 = vmov 2475754826   ;;  %v5086_v2 = vmov 2131351028   ;;  %s377_s29 = sand.u32 1, %s3383_s27  }
  0x2b   : > { %488 = vperm.xlu0 %3332, %v483_v16   ;;  %2799 = vmatprep.mubr.bf16.mxu1 %v3393_v17  ;;  %v3506_v20 = vshrl.u32 %v5066_v19, 7  ;;  %v5084_v4 = vmov 2102212464   ;;  %v5077_v6 = vmov 920167782   ;;  %s4110_s27 = sshll.u32 %s377_s29, 6 }
  0x2c   : > { %s5183_s16 = smov (!%p437_p8, %s3187_s16), 7  ;;  %v5074_v13 = vmov 1326507024   ;;  %s4127_s30 = scalar_lea.vmem [#allocation3], %s4110_s27 }
  0x2d   : > { %5112 = vst [vmem:[#allocation4_spill] sm:$0xff] %v3506_v20  ;;  %s452_s19 = scalar_lea.vmem %s5061_s4, %s5183_s16  ;;  %v3513_v21 = vsub.s32 0, %v3506_v20  ;;  %v3516_v22 = vsub.s32 1, %v3506_v20  ;;  %v3519_v24 = vsub.s32 2, %v3506_v20  ;;  %v3554_v43 = vsub.s32 3, %v3506_v20  ;;  %s3188_s20 = sshll.u32 %s5183_s16, 2 }
  0x2e   : > { %v485_v23 = vld [vmem:[%s452_s19] sm:$0xf]  ;;  %s440_s23 = scalar_lea.vmem %s5058_s1, %s3188_s20  ;;  %s379_s24 = scalar_lea.vmem [#allocation2], %s4110_s27 }
  0x2f   : > { %493 = vperm.xlu0 %3332, %v484_v18   ;;  %5113 = vst [vmem:[#allocation5_spill] sm:$0xff] %v3513_v21  ;;  %5114 = vst [vmem:[#allocation6_spill] sm:$0xff] %v3516_v22  ;;  %v3522_v25 = vrot.slane %v485_v23, %v3513_v21  ;;  %v3525_v26 = vrot.slane %v485_v23, %v3516_v22  ;;  %v3530_v28 = vrot.slane %v485_v23, %v3519_v24  ;;  %s3190_s25 = sshll.u32 %s5183_s16, 3  ;;  %s3193_s29 = sshll.u32 %s5183_s16, 1 }
  0x30   : > { %5115 = vst [vmem:[#allocation7_spill] sm:$0xff] %v3519_v24  ;;  %5116 = vst [vmem:[#allocation8_spill] sm:$0xff] %v3554_v43  ;;  %v3557_v52 = vrot.slane %v485_v23, %v3554_v43  ;;  %s447_s11 = scalar_lea.vmem %s5060_s3, %s3190_s25  ;;  %s458_s20 = scalar_lea.vmem %s5065_s8, %s3193_s29 }
  0xaa   : > { %v3527_v27 = vpop.permute.xlu0 %488 }
  0xab   : > { %v3534_v29 = vmul.f32 %v3522_v25, %v3527_v27  ;;  %v3538_v30 = vmul.f32 %v3525_v26, %v3527_v27  ;;  %v3546_v35 = vmul.f32 %v3530_v28, %v3527_v27 }
  0xad   : > { %v525_v31 = vand.u32 2147483647, %v3534_v29  ;;  %v528_v32 = vand.u32 2139095040, %v3534_v29  ;;  %v628_v33 = vand.u32 2147483647, %v3538_v30  ;;  %v631_v34 = vand.u32 2139095040, %v3538_v30 }
  0xae   : > { %v734_v42 = vand.u32 2139095040, %v3546_v35  ;;  %v731_v58 = vand.u32 2147483647, %v3546_v35 }
  0xaf   : > { %v529_v36 = vshrl.u32 %v528_v32, 23  ;;  %v632_v37 = vshrl.u32 %v631_v34, 23  ;;  %v532_v38 = vand.u32 8388607, %v525_v31  ;;  %v635_v39 = vand.u32 8388607, %v628_v33 }
  0xb0   : > { %v735_v48 = vshrl.u32 %v734_v42, 23 }
  0xb1   : > { %v3194_v40 = vadd.s32 4294967169, %v529_v36  ;;  %v3198_v41 = vadd.s32 4294967169, %v632_v37  ;;  %v533_v46 = vor.u32 8388608, %v532_v38  ;;  %v636_v47 = vor.u32 8388608, %v635_v39 }
  0xb2   : > { %v3202_v51 = vadd.s32 4294967169, %v735_v48 }
  0xb3   : > { %v535_v44 = vadd.s32 1, %v3194_v40  ;;  %v638_v45 = vadd.s32 1, %v3198_v41  ;;  %v3559_v55 = vshll.u32 %v533_v46, 8  ;;  %v3563_v57 = vshll.u32 %v636_v47, 8 }
  0xb4   : > { %v3567_v63 = vadd.s32 1, %v3202_v51 }
  0xb5   : > { %vm536_vm0 = vcmp.gt.s32.totalorder %v535_v44, 0  ;;  %vm639_vm1 = vcmp.gt.s32.totalorder %v638_v45, 0 }
  0xb6   : > { %v537_v49 = vsel %vm536_vm0, %v535_v44, 0  ;;  %v640_v50 = vsel %vm639_vm1, %v638_v45, 0  ;;  %vm742_vm11 = vcmp.gt.s32.totalorder %v3567_v63, 0 }
  0xb7   : > { %v538_v53 = vshrl.u32 %v537_v49, 5  ;;  %v539_v54 = vand.u32 31, %v537_v49  ;;  %v3561_v56 = vshrl.u32 %v640_v50, 5  ;;  %v642_v62 = vand.u32 31, %v640_v50 }
  0xb9   : > { %v540_v59 = vsub.s32 32, %v539_v54  ;;  %v542_v61 = vshll.u32 %v5090_v60, %v539_v54  ;;  %v545_v1 = vshll.u32 %v5082_v0, %v539_v54  ;;  %v548_v3 = vshll.u32 %v5086_v2, %v539_v54 }
  0xba   : > { %v551_v5 = vshll.u32 %v5084_v4, %v539_v54  ;;  %v554_v7 = vshll.u32 %v5077_v6, %v539_v54  ;;  %vm557_vm2 = vcmp.lt.s32.totalorder %v538_v53, 1  ;;  %vm558_vm3 = vcmp.lt.s32.totalorder %v538_v53, 2 }
  0xbb   : > { %v543_v8 = vshrl.u32 %v5082_v0, %v540_v59  ;;  %v546_v9 = vshrl.u32 %v5086_v2, %v540_v59  ;;  %v549_v10 = vshrl.u32 %v5084_v4, %v540_v59  ;;  %v541_v11 = vshrl.u32 %v5090_v60, %v540_v59 }
  0xbc   : > { %v552_v12 = vshrl.u32 %v5077_v6, %v540_v59  ;;  %v555_v14 = vshrl.u32 %v5074_v13, %v540_v59  ;;  %v643_v18 = vsub.s32 32, %v642_v62  ;;  %vm559_vm4 = vcmp.lt.s32.totalorder %v538_v53, 3 }
  0xbd   : > { %v544_v15 = vor.u32 %v543_v8, %v542_v61  ;;  %v547_v16 = vor.u32 %v546_v9, %v545_v1  ;;  %v550_v17 = vor.u32 %v549_v10, %v548_v3  ;;  %vm560_vm5 = vcmp.lt.s32.totalorder %v538_v53, 4 }
  0xbe   : > { %v553_v23 = vor.u32 %v552_v12, %v551_v5  ;;  %v556_v32 = vor.u32 %v555_v14, %v554_v7  ;;  %v645_v42 = vshll.u32 %v5090_v60, %v642_v62  ;;  %v646_v46 = vshrl.u32 %v5082_v0, %v643_v18 }
  0xbf   : > { %v561_v34 = vsel %vm557_vm2, %v541_v11, %v544_v15  ;;  %v562_v36 = vsel %vm560_vm5, %v550_v17, 2102212464  ;;  %v565_v37 = vsel %vm557_vm2, %v544_v15, %v547_v16  ;;  %v569_v38 = vsel %vm557_vm2, %v547_v16, %v550_v17 }
  0xc0   : > { %v563_v39 = vsel %vm559_vm4, %v547_v16, %v562_v36  ;;  %v566_v40 = vsel %vm560_vm5, %v553_v23, 920167782  ;;  %v570_v41 = vsel %vm560_vm5, %v556_v32, 1326507024  ;;  %v648_v47 = vshll.u32 %v5082_v0, %v642_v62 }
  0xc1   : > { %v567_v44 = vsel %vm559_vm4, %v550_v17, %v566_v40  ;;  %v571_v45 = vsel %vm559_vm4, %v553_v23, %v570_v41  ;;  %v564_v48 = vsel %vm558_vm3, %v561_v34, %v563_v39  ;;  %v649_v51 = vshrl.u32 %v5086_v2, %v643_v18 }
  0xc2   : > { %v568_v49 = vsel %vm558_vm3, %v565_v37, %v567_v44  ;;  %v572_v50 = vsel %vm558_vm3, %v569_v38, %v571_v45  ;;  %v647_v3 = vor.u32 %v646_v46, %v645_v42  ;;  %v651_v7 = vshll.u32 %v5086_v2, %v642_v62 }
  0xc3   : > { %v3590_v54 = vmul.u32.u64.low %v3559_v55, %v572_v50  ;;  %v3591_v59 = vmul.u32.u64.high %v3559_v55, %v572_v50, %v3590_v54  ;;  %v3594_v61 = vmul.u32.u64.low %v3559_v55, %v568_v49  ;;  %v3595_v1 = vmul.u32.u64.high %v3559_v55, %v568_v49, %v3594_v61 }
  0xc4   : > { %v650_v5 = vor.u32 %v649_v51, %v648_v47  ;;  %v652_v8 = vshrl.u32 %v5084_v4, %v643_v18  ;;  %v644_v53 = vshrl.u32 %v5090_v60, %v643_v18  ;;  %v654_v9 = vshll.u32 %v5084_v4, %v642_v62 }
  0xc5   : > { %v655_v10 = vshrl.u32 %v5077_v6, %v643_v18  ;;  %v658_v11 = vshrl.u32 %v5074_v13, %v643_v18  ;;  %v580_v12 = vmul.u32 %v3559_v55, %v564_v48  ;;  %v657_v15 = vshll.u32 %v5077_v6, %v642_v62 }
  0xc6   : > { %v653_v14 = vor.u32 %v652_v8, %v651_v7  ;;  %vm660_vm6 = vcmp.lt.s32.totalorder %v3561_v56, 1  ;;  %vm582_vm7 = vc.u32 %v3591_v59, %v3594_v61  ;;  %v583_v16 = vadd.s32 1, %v3595_v1 }
  0xc7   : > { %v656_v17 = vor.u32 %v655_v10, %v654_v9  ;;  %vm661_vm8 = vcmp.lt.s32.totalorder %v3561_v56, 2  ;;  %v659_v23 = vor.u32 %v658_v11, %v657_v15  ;;  %vm662_vm9 = vcmp.lt.s32.totalorder %v3561_v56, 3 }
  0xc8   : > { %vm663_vm10 = vcmp.lt.s32.totalorder %v3561_v56, 4  ;;  %v668_v18 = vsel %vm660_vm6, %v647_v3, %v650_v5  ;;  %v584_v55 = vsel %vm582_vm7, %v583_v16, %v3595_v1  ;;  %v672_v34 = vsel %vm660_vm6, %v650_v5, %v653_v14 }
  0xc9   : > { %v665_v32 = vsel %vm663_vm10, %v653_v14, 2102212464  ;;  %v669_v62 = vsel %vm663_vm10, %v656_v17, 920167782  ;;  %v585_v36 = vadd.s32 %v584_v55, %v580_v12  ;;  %v664_v37 = vsel %vm660_vm6, %v644_v53, %v647_v3 }
  0xca   : > { %v670_v38 = vsel %vm662_vm9, %v653_v14, %v669_v62  ;;  %v673_v39 = vsel %vm663_vm10, %v659_v23, 1326507024  ;;  %v666_v40 = vsel %vm662_vm9, %v650_v5, %v665_v32  ;;  %v3626_v48 = vmul.f32 %v3557_v52, %v3527_v27 }
  0xcb   : > { %v671_v41 = vsel %vm661_vm8, %v668_v18, %v670_v38  ;;  %v674_v42 = vsel %vm662_vm9, %v656_v17, %v673_v39  ;;  %v586_v44 = vadd.s32 536870912, %v585_v36  ;;  %v743_v51 = vsel %vm742_vm11, %v3567_v63, 0 }
  0xcc   : > { %v675_v45 = vsel %vm661_vm8, %v672_v34, %v674_v42  ;;  %v3620_v46 = vmul.u32.u64.low %v3563_v57, %v671_v41  ;;  %v3621_v47 = vmul.u32.u64.high %v3563_v57, %v671_v41, %v3620_v46  ;;  %v667_v1 = vsel %vm661_vm8, %v664_v37, %v666_v40 }
  0xcd   : > { %v3629_v49 = vmul.u32.u64.low %v3563_v57, %v675_v45  ;;  %v3630_v50 = vmul.u32.u64.high %v3563_v57, %v675_v45, %v3629_v49  ;;  %v3633_v54 = vshrl.u32 %v586_v44, 30  ;;  %v745_v3 = vand.u32 31, %v743_v51 }
  0xce   : > { %v686_v7 = vadd.s32 1, %v3621_v47  ;;  %v738_v27 = vand.u32 8388607, %v731_v58  ;;  %v683_v53 = vmul.u32 %v3563_v57, %v667_v1  ;;  %v837_v63 = vand.u32 2139095040, %v3626_v48 }
  0xcf   : > { %v588_v5 = vshll.u32 %v3633_v54, 30  ;;  %v746_v8 = vsub.s32 32, %v745_v3  ;;  %vm685_vm12 = vc.u32 %v3630_v50, %v3620_v46  ;;  %v744_v18 = vshrl.u32 %v743_v51, 5 }
  0xd0   : > { %v687_v56 = vsel %vm685_vm12, %v686_v7, %v3621_v47  ;;  %v739_v12 = vor.u32 8388608, %v738_v27  ;;  %v838_v17 = vshrl.u32 %v837_v63, 23  ;;  %v748_v57 = vshll.u32 %v5090_v60, %v745_v3 }
  0xd1   : > { %v589_v9 = vsub.s32 %v585_v36, %v588_v5  ;;  %v688_v10 = vadd.s32 %v687_v56, %v683_v53  ;;  %v749_v14 = vshrl.u32 %v5082_v0, %v746_v8  ;;  %v752_v16 = vshrl.u32 %v5086_v2, %v746_v8 }
  0xd2   : > { %v755_v55 = vshrl.u32 %v5084_v4, %v746_v8  ;;  %v751_v62 = vshll.u32 %v5082_v0, %v745_v3  ;;  %v757_v34 = vshll.u32 %v5084_v4, %v745_v3  ;;  %v758_v36 = vshrl.u32 %v5077_v6, %v746_v8 }
  0xd3   : > { %v591_v11 = vsub.s32 0, %v589_v9  ;;  %v689_v15 = vadd.s32 536870912, %v688_v10  ;;  %v750_v38 = vor.u32 %v749_v14, %v748_v57  ;;  %v754_v39 = vshll.u32 %v5086_v2, %v745_v3 }
  0xd4   : > { %v3656_v40 = vshll.u32 %v739_v12, 8  ;;  %v753_v42 = vor.u32 %v752_v16, %v751_v62  ;;  %v759_v44 = vor.u32 %v758_v36, %v757_v34  ;;  %v761_v45 = vshrl.u32 %v5074_v13, %v746_v8 }
  0xd5   : > { %v3195_v23 = vmin.u32 %v591_v11, %v589_v9  ;;  %v3650_v32 = vshrl.u32 %v689_v15, 30  ;;  %v581_v47 = vadd.s32 %v3594_v61, %v3591_v59  ;;  %v756_v51 = vor.u32 %v755_v55, %v754_v39  ;;  %v3675_v55 = vpop.permute.xlu0 %493 }
  0xd6   : > { %v3206_v1 = vadd.s32 4294967169, %v838_v17  ;;  %v747_v7 = vshrl.u32 %v5090_v60, %v746_v8  ;;  %v760_v27 = vshll.u32 %v5077_v6, %v745_v3  ;;  %vm766_vm13 = vcmp.lt.s32.totalorder %v744_v18, 4 }
  0xd7   : > { %v593_v37 = vclz %v3195_v23  ;;  %v691_v41 = vshll.u32 %v3650_v32, 30  ;;  %vm763_vm15 = vcmp.lt.s32.totalorder %v744_v18, 1  ;;  %vm765_vm0 = vcmp.lt.s32.totalorder %v744_v18, 3 }
  0xd8   : > { %v772_v53 = vsel %vm766_vm13, %v759_v44, 920167782  ;;  %v762_v11 = vor.u32 %v761_v45, %v760_v27  ;;  %v771_v59 = vsel %vm763_vm15, %v750_v38, %v753_v42  ;;  %vm764_vm1 = vcmp.lt.s32.totalorder %v744_v18, 2 }
  0xd9   : > { %v3196_v49 = vadd.s32 4294967294, %v593_v37  ;;  %v3662_v5 = vsub.s32 %v688_v10, %v691_v41  ;;  %v773_v10 = vsel %vm765_vm0, %v756_v51, %v772_v53  ;;  %v767_v14 = vsel %vm763_vm15, %v747_v7, %v750_v38 }
  0xda   : > { %v768_v15 = vsel %vm766_vm13, %v756_v51, 2102212464  ;;  %v774_v23 = vsel %vm764_vm1, %v771_v59, %v773_v10  ;;  %v775_v57 = vsel %vm763_vm15, %v753_v42, %v756_v51  ;;  %v776_v34 = vsel %vm766_vm13, %v762_v11, 1326507024 }
  0xdb   : > { %vm3197_vm14 = vcmp.lt.s32.totalorder %v3196_v49, 0  ;;  %v694_v56 = vsub.s32 0, %v3662_v5  ;;  %v769_v39 = vsel %vm765_vm0, %v753_v42, %v768_v15  ;;  %v777_v41 = vsel %vm765_vm0, %v759_v44, %v776_v34 }
  0xdc   : > { %v596_v63 = vsel %vm3197_vm14, 0, %v3196_v49  ;;  %v834_v49 = vand.u32 2147483647, %v3626_v48  ;;  %v844_v51 = vadd.s32 1, %v3206_v1  ;;  %v3689_v7 = vmul.f32 %v3522_v25, %v3675_v55 }
  0xdd   : > { %v597_v61 = vsub.s32 32, %v596_v63  ;;  %v601_v12 = vsub.s32 4294967266, %v596_v63  ;;  %v598_v8 = vshll.u32 %v589_v9, %v596_v63  ;;  %v3199_v3 = vmin.u32 %v694_v56, %v3662_v5 }
  0xde   : > { %v3679_v36 = vmul.u32.u64.low %v3656_v40, %v774_v23  ;;  %v3680_v9 = vmul.u32.u64.high %v3656_v40, %v774_v23, %v3679_v36  ;;  %v770_v42 = vsel %vm764_vm1, %v767_v14, %v769_v39  ;;  %vm845_vm3 = vcmp.gt.s32.totalorder %v844_v51, 0 }
  0xdf   : > { %v599_v16 = vshrl.u32 %v581_v47, %v597_v61  ;;  %v602_v17 = vadd.s32 127, %v601_v12  ;;  %v696_v62 = vclz %v3199_v3  ;;  %v778_v47 = vsel %vm764_vm1, %v775_v57, %v777_v41 }
  0xe0   : > { %v3692_v53 = vmul.u32.u64.low %v3656_v40, %v778_v47  ;;  %v3693_v63 = vmul.u32.u64.high %v3656_v40, %v778_v47, %v3692_v53  ;;  %v789_v44 = vadd.s32 1, %v3680_v9  ;;  %v846_v61 = vsel %vm845_vm3, %v844_v51, 0 }
  0xe1   : > { %v600_v37 = vor.u32 %v599_v16, %v598_v8  ;;  %v603_v38 = vshll.u32 %v602_v17, 23  ;;  %v3200_v45 = vadd.s32 4294967294, %v696_v62  ;;  %v684_v1 = vadd.s32 %v3620_v46, %v3630_v50 }
  0xe2   : > { %v841_v10 = vand.u32 8388607, %v834_v49  ;;  %v786_v3 = vmul.u32 %v3656_v40, %v770_v42  ;;  %vm788_vm4 = vc.u32 %v3693_v63, %v3679_v36  ;;  %v848_v18 = vand.u32 31, %v846_v61 }
  0xe3   : > { %v604_v27 = vor.u32 4788187, %v603_v38  ;;  %vm3201_vm2 = vcmp.lt.s32.totalorder %v3200_v45, 0  ;;  %v607_v11 = vcvt.s32.f32 %v600_v37  ;;  %v790_v16 = vsel %vm788_vm4, %v789_v44, %v3680_v9 }
  0xe4   : > { %v699_v59 = vsel %vm3201_vm2, 0, %v3200_v45  ;;  %v791_v17 = vadd.s32 %v790_v16, %v786_v3  ;;  %v849_v23 = vsub.s32 32, %v848_v18  ;;  %vm3707_vm5 = vcmp.le.f32.partialorder %v525_v31, 0.7853982 }
  0xe5   : > { %v605_v56 = vand.u32 2147483647, %v604_v27  ;;  %v700_v25 = vsub.s32 32, %v699_v59  ;;  %v704_v12 = vsub.s32 4294967266, %v699_v59  ;;  %vm527_vm6 = vcmp.lt.s32.totalorder %v3534_v29, 0 }
  0xe6   : > { %v701_v50 = vshll.u32 %v3662_v5, %v699_v59  ;;  %v792_v62 = vadd.s32 536870912, %v791_v17  ;;  %v842_v34 = vor.u32 8388608, %v841_v10  ;;  %v940_v37 = vand.u32 2139095040, %v3689_v7 }
  0xe7   : > { %v608_v8 = vmul.f32 %v607_v11, %v605_v56  ;;  %v702_v14 = vshrl.u32 %v684_v1, %v700_v25  ;;  %v705_v15 = vadd.s32 127, %v704_v12  ;;  %v852_v39 = vshrl.u32 %v5082_v0, %v849_v23 }
  0xe8   : > { %v855_v41 = vshrl.u32 %v5086_v2, %v849_v23  ;;  %v611_v31 = vsub.s32 4, %v3633_v54  ;;  %v3717_v45 = vshrl.u32 %v792_v62, 30  ;;  %v847_v47 = vshrl.u32 %v846_v61, 5 }
  0xe9   : > { %v706_v40 = vshll.u32 %v705_v15, 23  ;;  %v609_v57 = vxor.u32 2147483648, %v608_v8  ;;  %v703_v38 = vor.u32 %v702_v14, %v701_v50  ;;  %v858_v51 = vshrl.u32 %v5084_v4, %v849_v23 }
  0xea   : > { %v851_v27 = vshll.u32 %v5090_v60, %v848_v18  ;;  %v854_v53 = vshll.u32 %v5082_v0, %v848_v18  ;;  %v857_v42 = vshll.u32 %v5086_v2, %v848_v18  ;;  %v794_v56 = vshll.u32 %v3717_v45, 30 }
  0xeb   : > { %v707_v9 = vor.u32 4788187, %v706_v40  ;;  %v610_v44 = vsel %vm527_vm6, %v609_v57, %v608_v8  ;;  %v860_v11 = vshll.u32 %v5084_v4, %v848_v18  ;;  %v861_v59 = vshrl.u32 %v5077_v6, %v849_v23 }
  0xec   : > { %v710_v1 = vcvt.s32.f32 %v703_v38  ;;  %v853_v61 = vor.u32 %v852_v39, %v851_v27  ;;  %v856_v25 = vor.u32 %v855_v41, %v854_v53  ;;  %v864_v12 = vshrl.u32 %v5074_v13, %v849_v23 }
  0xed   : > { %v708_v5 = vand.u32 2147483647, %v707_v9  ;;  %v612_v10 = vsel %vm527_vm6, %v611_v31, %v3633_v54  ;;  %vm630_vm7 = vcmp.lt.s32.totalorder %v3538_v30, 0  ;;  %v3733_v3 = vsub.s32 %v791_v17, %v794_v56 }
  0xee   : > { %v859_v8 = vor.u32 %v858_v51, %v857_v42  ;;  %v862_v14 = vor.u32 %v861_v59, %v860_v11  ;;  %v613_v15 = vsel %vm3707_vm5, %v3534_v29, %v610_v44  ;;  %v863_v50 = vshll.u32 %v5077_v6, %v848_v18 }
  0xef   : > { %v711_v16 = vmul.f32 %v710_v1, %v708_v5  ;;  %v3739_v40 = vshll.u32 %v842_v34, 8  ;;  %v797_v57 = vsub.s32 0, %v3733_v3  ;;  %vm866_vm8 = vcmp.lt.s32.totalorder %v847_v47, 1 }
  0xf0   : > { %vm869_vm9 = vcmp.lt.s32.totalorder %v847_v47, 4  ;;  %v941_v54 = vshrl.u32 %v940_v37, 23  ;;  %v850_v62 = vshrl.u32 %v5090_v60, %v849_v23  ;;  %v865_v17 = vor.u32 %v864_v12, %v863_v50 }
  0xf1   : > { %v874_v38 = vsel %vm866_vm8, %v853_v61, %v856_v25  ;;  %v875_v9 = vsel %vm869_vm9, %v862_v14, 920167782  ;;  %3337 = vcosq.f32 %v613_v15  ;;  %v3203_v39 = vmin.u32 %v797_v57, %v3733_v3 }
  0xf2   : > { %vm868_vm10 = vcmp.lt.s32.totalorder %v847_v47, 3  ;;  %v871_v18 = vsel %vm869_vm9, %v859_v8, 2102212464  ;;  %3339 = vsinq.f32 %v613_v15  ;;  %v712_v34 = vxor.u32 2147483648, %v711_v16 }
  0xf3   : > { %vm867_vm11 = vcmp.lt.s32.totalorder %v847_v47, 2  ;;  %v876_v41 = vsel %vm868_vm10, %v859_v8, %v875_v9  ;;  %v799_v31 = vclz %v3203_v39  ;;  %v870_v37 = vsel %vm866_vm8, %v850_v62, %v853_v61 }
  0xf4   : > { %v877_v23 = vsel %vm867_vm11, %v874_v38, %v876_v41  ;;  %v878_v51 = vsel %vm866_vm8, %v856_v25, %v859_v8  ;;  %v872_v5 = vsel %vm868_vm10, %v856_v25, %v871_v18  ;;  %v879_v27 = vsel %vm869_vm9, %v865_v17, 1326507024 }
  0xf5   : > { %v3754_v53 = vmul.u32.u64.low %v3739_v40, %v877_v23  ;;  %v3755_v42 = vmul.u32.u64.high %v3739_v40, %v877_v23, %v3754_v53  ;;  %v3760_v44 = vmul.f32 %v3525_v26, %v3675_v55  ;;  %v3764_v56 = vsel %vm3707_vm5, 0, %v612_v10 }
  0xf6   : > { %v3204_v11 = vadd.s32 4294967294, %v799_v31  ;;  %v880_v59 = vsel %vm868_vm10, %v862_v14, %v879_v27  ;;  %v713_v1 = vsel %vm630_vm7, %v712_v34, %v711_v16  ;;  %v714_v61 = vsub.s32 4, %v3650_v32 }
  0xf7   : > { %v881_v25 = vsel %vm867_vm11, %v878_v51, %v880_v59  ;;  %v3210_v12 = vadd.s32 4294967169, %v941_v54  ;;  %v873_v8 = vsel %vm867_vm11, %v870_v37, %v872_v5  ;;  %vm3778_vm13 = vcmp.le.f32.partialorder %v628_v33, 0.7853982 }
  0xf8   : > { %vm3205_vm12 = vcmp.lt.s32.totalorder %v3204_v11, 0  ;;  %v3773_v26 = vmul.u32.u64.low %v3739_v40, %v881_v25  ;;  %v3774_v15 = vmul.u32.u64.high %v3739_v40, %v881_v25, %v3773_v26  ;;  %v892_v14 = vadd.s32 1, %v3755_v42 }
  0xf9   : > { %v802_v10 = vsel %vm3205_vm12, 0, %v3204_v11  ;;  %v937_v16 = vand.u32 2147483647, %v3689_v7  ;;  %v716_v47 = vsel %vm3778_vm13, %v3538_v30, %v713_v1  ;;  %v787_v50 = vadd.s32 %v3679_v36, %v3693_v63 }
  0xfa   : > { %v803_v57 = vsub.s32 32, %v802_v10  ;;  %v807_v54 = vsub.s32 4294967266, %v802_v10  ;;  %v3790_v62 = vand.u32 3, %v3764_v56  ;;  %v715_v33 = vsel %vm630_vm7, %v714_v61, %v3650_v32 }
  0xfb   : > { %v889_v17 = vmul.u32 %v3739_v40, %v873_v8  ;;  %v947_v38 = vadd.s32 1, %v3210_v12  ;;  %v3796_v9 = vpop.eup %3337  ;;  %v804_v39 = vshll.u32 %v3733_v3, %v802_v10  ;;  %vm891_vm14 = vc.u32 %v3774_v15, %v3754_v53 }
  0xfc   : > { %v805_v18 = vshrl.u32 %v787_v50, %v803_v57  ;;  %v808_v34 = vadd.s32 127, %v807_v54  ;;  %v3801_v36 = vpop.eup %3339  ;;  %3341 = vcosq.f32 %v716_v47  ;;  %v893_v63 = vsel %vm891_vm14, %v892_v14, %v3755_v42 }
  0xfd   : > { %v944_v32 = vand.u32 8388607, %v937_v16  ;;  %vm948_vm15 = vcmp.gt.s32.totalorder %v947_v38, 0  ;;  %v3808_v40 = vmul.f32 %v3530_v28, %v3675_v55  ;;  %v894_v31 = vadd.s32 %v893_v63, %v889_v17 }
  0xfe   : > { %v806_v41 = vor.u32 %v805_v18, %v804_v39  ;;  %v809_v3 = vshll.u32 %v808_v34, 23  ;;  %v3812_v37 = vmul.f32 %v3557_v52, %v3675_v55  ;;  %v3816_v23 = vsel %vm3778_vm13, 0, %v715_v33 }
  0xff   : > { %v817_v51 = vsub.s32 4, %v3717_v45  ;;  %v949_v5 = vsel %vm948_vm15, %v947_v38, 0  ;;  %v5072_v27 = vxor.u32 2147483648, %v3801_v36  ;;  %v5067_v42 = vxor.u32 2147483648, %v3796_v9 }
 0x100   : > { %v810_v28 = vor.u32 4788187, %v809_v3  ;;  %v895_v11 = vadd.s32 536870912, %v894_v31  ;;  %vm620_vm0 = vcmp.eq.s32.totalorder %v3790_v62, 0  ;;  %vm733_vm1 = vcmp.lt.s32.totalorder %v3546_v35, 0 }
 0x101   : > { %v945_v59 = vor.u32 8388608, %v944_v32  ;;  %v951_v52 = vand.u32 31, %v949_v5  ;;  %vm623_vm2 = vcmp.eq.s32.totalorder %v3790_v62, 2  ;;  %v813_v1 = vcvt.s32.f32 %v806_v41 }
 0x102   : > { %v811_v55 = vand.u32 2147483647, %v810_v28  ;;  %v3824_v61 = vshrl.u32 %v895_v11, 30  ;;  %3343 = vsinq.f32 %v716_v47  ;;  %v3827_v25 = vand.u32 3, %v3816_v23 }
 0x103   : > { %v3832_v12 = vsel %vm733_vm1, %v817_v51, %v3717_v45  ;;  %v952_v8 = vsub.s32 32, %v951_v52  ;;  %v3837_v26 = vsel %vm620_vm0, %v3796_v9, %v5072_v27  ;;  %v3842_v46 = vsel %vm623_vm2, %v5067_v42, %v3801_v36 }
 0x104   : > { %v814_v10 = vmul.f32 %v813_v1, %v811_v55  ;;  %v897_v14 = vshll.u32 %v3824_v61, 30  ;;  %v3848_v57 = vshll.u32 %v945_v59, 8  ;;  %v954_v33 = vshll.u32 %v5090_v60, %v951_v52 }
 0x105   : > { %v955_v47 = vshrl.u32 %v5082_v0, %v952_v8  ;;  %v958_v50 = vshrl.u32 %v5086_v2, %v952_v8  ;;  %v961_v45 = vshrl.u32 %v5084_v4, %v952_v8  ;;  %v5076_v17 = vand.u32 2147483647, %v3760_v44 }
 0x106   : > { %v3850_v54 = vsub.s32 %v894_v31, %v897_v14  ;;  %v1043_v38 = vand.u32 2139095040, %v3760_v44  ;;  %v3855_v39 = vpop.eup %3341  ;;  %v815_v18 = vxor.u32 2147483648, %v814_v10  ;;  %v950_v34 = vshrl.u32 %v949_v5, 5 }
 0x107   : > { %v957_v63 = vshll.u32 %v5082_v0, %v951_v52  ;;  %v960_v32 = vshll.u32 %v5086_v2, %v951_v52  ;;  %v956_v3 = vor.u32 %v955_v47, %v954_v33  ;;  %v963_v31 = vshll.u32 %v5084_v4, %v951_v52 }
 0x108   : > { %v900_v41 = vsub.s32 0, %v3850_v54  ;;  %v964_v51 = vshrl.u32 %v5077_v6, %v952_v8  ;;  %vm3864_vm3 = vcmp.le.f32.partialorder %v731_v58, 0.7853982  ;;  %v966_v5 = vshll.u32 %v5077_v6, %v951_v52 }
 0x109   : > { %v959_v11 = vor.u32 %v958_v50, %v957_v63  ;;  %v962_v59 = vor.u32 %v961_v45, %v960_v32  ;;  %v967_v55 = vshrl.u32 %v5074_v13, %v952_v8  ;;  %v5068_v1 = vxor.u32 2147483648, %v3855_v39 }
 0x10a   : > { %v890_v14 = vadd.s32 %v3754_v53, %v3774_v15  ;;  %v3207_v47 = vmin.u32 %v900_v41, %v3850_v54  ;;  %v1044_v33 = vshrl.u32 %v1043_v38, 23  ;;  %v816_v58 = vsel %vm733_vm1, %v815_v18, %v814_v10 }
 0x10b   : > { %v953_v19 = vshrl.u32 %v5090_v60, %v952_v8  ;;  %v965_v42 = vor.u32 %v964_v51, %v963_v31  ;;  %v968_v50 = vor.u32 %v967_v55, %v966_v5  ;;  %vm619_vm4 = vcmp.lt.s32.totalorder %v3790_v62, 2 }
 0x10c   : > { %v902_v52 = vclz %v3207_v47  ;;  %vm969_vm5 = vcmp.lt.s32.totalorder %v950_v34, 1  ;;  %vm970_vm6 = vcmp.lt.s32.totalorder %v950_v34, 2  ;;  %vm972_vm7 = vcmp.lt.s32.totalorder %v950_v34, 4  ;;  %v3878_v45 = vpop.eup %3343 }
 0x10d   : > { %vm723_vm8 = vcmp.eq.s32.totalorder %v3827_v25, 0  ;;  %vm726_vm9 = vcmp.eq.s32.totalorder %v3827_v25, 2  ;;  %vm971_vm10 = vcmp.lt.s32.totalorder %v950_v34, 3  ;;  %v974_v53 = vsel %vm972_vm7, %v962_v59, 2102212464 }
 0x10e   : > { %v977_v15 = vsel %vm969_vm5, %v956_v3, %v959_v11  ;;  %v978_v10 = vsel %vm972_vm7, %v965_v42, 920167782  ;;  %v3208_v38 = vadd.s32 4294967294, %v902_v52  ;;  %v973_v8 = vsel %vm969_vm5, %v953_v19, %v956_v3 }
 0x10f   : > { %v979_v18 = vsel %vm971_vm10, %v962_v59, %v978_v10  ;;  %v981_v63 = vsel %vm969_vm5, %v959_v11, %v962_v59  ;;  %v975_v32 = vsel %vm971_vm10, %v959_v11, %v974_v53  ;;  %v982_v31 = vsel %vm972_vm7, %v968_v50, 1326507024 }
 0x110   : > { %v980_v41 = vsel %vm970_vm6, %v977_v15, %v979_v18  ;;  %v3214_v51 = vadd.s32 4294967169, %v1044_v33  ;;  %vm617_vm11 = vweird.f32 %v3534_v29  ;;  %vm722_vm12 = vcmp.lt.s32.totalorder %v3827_v25, 2 }
 0x111   : > { %vm3209_vm13 = vcmp.lt.s32.totalorder %v3208_v38, 0  ;;  %v983_v5 = vsel %vm971_vm10, %v965_v42, %v982_v31  ;;  %v3886_v55 = vmul.u32.u64.low %v3848_v57, %v980_v41  ;;  %v3887_v47 = vmul.u32.u64.high %v3848_v57, %v980_v41, %v3886_v55 }
 0x112   : > { %v5069_v19 = vxor.u32 2147483648, %v3878_v45  ;;  %v905_v3 = vsel %vm3209_vm13, 0, %v3208_v38  ;;  %v984_v11 = vsel %vm970_vm6, %v981_v63, %v983_v5  ;;  %v1050_v59 = vadd.s32 1, %v3214_v51 }
 0x113   : > { %v819_v33 = vsel %vm3864_vm3, %v3546_v35, %v816_v58  ;;  %v906_v50 = vsub.s32 32, %v905_v3  ;;  %v910_v52 = vsub.s32 4294967266, %v905_v3  ;;  %v976_v53 = vsel %vm970_vm6, %v973_v8, %v975_v32 }
 0x114   : > { %vm836_vm14 = vcmp.lt.s32.totalorder %v3626_v48, 0  ;;  %v907_v42 = vshll.u32 %v3850_v54, %v905_v3  ;;  %v3899_v15 = vmul.u32.u64.low %v3848_v57, %v984_v11  ;;  %v3900_v10 = vmul.u32.u64.high %v3848_v57, %v984_v11, %v3899_v15 }
 0x115   : > { %vm1051_vm15 = vcmp.gt.s32.totalorder %v1050_v59, 0  ;;  %v908_v38 = vshrl.u32 %v890_v14, %v906_v50  ;;  %v911_v18 = vadd.s32 127, %v910_v52  ;;  %v995_v63 = vadd.s32 1, %v3887_v47 }
 0x116   : > { %v1052_v41 = vsel %vm1051_vm15, %v1050_v59, 0  ;;  %v626_v34 = vsel %vm619_vm4, %v3837_v26, %v3842_v46  ;;  %v3910_v58 = vsel %vm3864_vm3, 0, %v3832_v12  ;;  %v1047_v54 = vand.u32 8388607, %v5076_v17 }
 0x117   : > { %v1054_v8 = vand.u32 31, %v1052_v41  ;;  %v725_v14 = vsel %vm723_vm8, %v3855_v39, %v5069_v19  ;;  %v728_v62 = vsel %vm726_vm9, %v5068_v1, %v3878_v45  ;;  %vm3926_vm0 = vcmp.le.f32.partialorder %v834_v49, 0.7853982 }
 0x118   : > { %v909_v26 = vor.u32 %v908_v38, %v907_v42  ;;  %v912_v46 = vshll.u32 %v911_v18, 23  ;;  %3345 = vcosq.f32 %v819_v33  ;;  %v992_v28 = vmul.u32 %v3848_v57, %v976_v53 }
 0x119   : > { %vm994_vm1 = vc.u32 %v3900_v10, %v3886_v55  ;;  %v1055_v32 = vsub.s32 32, %v1054_v8  ;;  %3347 = vsinq.f32 %v819_v33  ;;  %v920_v51 = vsub.s32 4, %v3824_v61 }
 0x11a   : > { %v913_v31 = vor.u32 4788187, %v912_v46  ;;  %v996_v5 = vsel %vm994_vm1, %v995_v63, %v3887_v47  ;;  %v3937_v49 = vsel %vm617_vm11, nan, %v626_v34  ;;  %v3941_v3 = vsel %vm722_vm12, %v725_v14, %v728_v62 }
 0x11b   : > { %v3944_v57 = vand.u32 3, %v3910_v58  ;;  %v997_v11 = vadd.s32 %v996_v5, %v992_v28  ;;  %v916_v50 = vcvt.s32.f32 %v909_v26  ;;  %v1048_v33 = vor.u32 8388608, %v1047_v54 }
 0x11c   : > { %v914_v59 = vand.u32 2147483647, %v913_v31  ;;  %v1058_v52 = vshrl.u32 %v5082_v0, %v1055_v32  ;;  %v1061_v47 = vshrl.u32 %v5086_v2, %v1055_v32  ;;  %v1063_v42 = vshll.u32 %v5086_v2, %v1054_v8 }
 0x11d   : > { %v998_v53 = vadd.s32 536870912, %v997_v11  ;;  %v1064_v15 = vshrl.u32 %v5084_v4, %v1055_v32  ;;  %v921_v25 = vsel %vm836_vm14, %v920_v51, %v3824_v61  ;;  %v1053_v18 = vshrl.u32 %v1052_v41, 5 }
 0x11e   : > { %v917_v38 = vmul.f32 %v916_v50, %v914_v59  ;;  %v1067_v63 = vshrl.u32 %v5077_v6, %v1055_v32  ;;  %v1057_v54 = vshll.u32 %v5090_v60, %v1054_v8  ;;  %v1060_v14 = vshll.u32 %v5082_v0, %v1054_v8 }
 0x11f   : > { %v3954_v34 = vshrl.u32 %v998_v53, 30  ;;  %v1065_v62 = vor.u32 %v1064_v15, %v1063_v42  ;;  %v1066_v46 = vshll.u32 %v5084_v4, %v1054_v8  ;;  %v1069_v28 = vshll.u32 %v5077_v6, %v1054_v8 }
 0x120   : > { %v918_v26 = vxor.u32 2147483648, %v917_v38  ;;  %v1070_v31 = vshrl.u32 %v5074_v13, %v1055_v32  ;;  %v3963_v61 = vsel %vm3926_vm0, 0, %v921_v25  ;;  %v1059_v51 = vor.u32 %v1058_v52, %v1057_v54 }
 0x121   : > { %v1000_v41 = vshll.u32 %v3954_v34, 30  ;;  %v1062_v5 = vor.u32 %v1061_v47, %v1060_v14  ;;  %vm720_vm2 = vweird.f32 %v3538_v30  ;;  %v1068_v50 = vor.u32 %v1067_v63, %v1066_v46 }
 0x122   : > { %v919_v59 = vsel %vm836_vm14, %v918_v26, %v917_v38  ;;  %v1071_v53 = vor.u32 %v1070_v31, %v1069_v28  ;;  %vm1075_vm3 = vcmp.lt.s32.totalorder %v1053_v18, 4  ;;  %v3969_v42 = vpop.eup %3345  ;;  %vm826_vm4 = vcmp.eq.s32.totalorder %v3944_v57, 0 }
 0x123   : > { %vm829_vm5 = vcmp.eq.s32.totalorder %v3944_v57, 2  ;;  %v922_v8 = vsel %vm3926_vm0, %v3626_v48, %v919_v59  ;;  %v3976_v52 = vsub.s32 %v997_v11, %v1000_v41  ;;  %v1056_v47 = vshrl.u32 %v5090_v60, %v1055_v32  ;;  %v3980_v38 = vpop.eup %3347 }
 0x124   : > { %v1077_v15 = vsel %vm1075_vm3, %v1065_v62, 2102212464  ;;  %3349 = vcosq.f32 %v922_v8  ;;  %vm939_vm6 = vcmp.lt.s32.totalorder %v3689_v7, 0  ;;  %vm1072_vm7 = vcmp.lt.s32.totalorder %v1053_v18, 1 }
 0x125   : > { %vm1074_vm8 = vcmp.lt.s32.totalorder %v1053_v18, 3  ;;  %v1088_v25 = vshll.u32 %v1048_v33, 8  ;;  %3351 = vsinq.f32 %v922_v8  ;;  %v1003_v63 = vsub.s32 0, %v3976_v52 }
 0x126   : > { %v1076_v54 = vsel %vm1072_vm7, %v1056_v47, %v1059_v51  ;;  %v1078_v12 = vsel %vm1074_vm8, %v1062_v5, %v1077_v15  ;;  %v1080_v11 = vsel %vm1072_vm7, %v1059_v51, %v1062_v5  ;;  %v1081_v14 = vsel %vm1075_vm3, %v1068_v50, 920167782 }
 0x127   : > { %v1084_v32 = vsel %vm1072_vm7, %v1062_v5, %v1065_v62  ;;  %v1085_v26 = vsel %vm1075_vm3, %v1071_v53, 1326507024  ;;  %v5071_v46 = vxor.u32 2147483648, %v3980_v38  ;;  %v5070_v28 = vxor.u32 2147483648, %v3969_v42 }
 0x128   : > { %v3211_v31 = vmin.u32 %v1003_v63, %v3976_v52  ;;  %v1023_v33 = vsub.s32 4, %v3954_v34  ;;  %vm1073_vm9 = vcmp.lt.s32.totalorder %v1053_v18, 2  ;;  %v1082_v41 = vsel %vm1074_vm8, %v1065_v62, %v1081_v14 }
 0x129   : > { %v1086_v59 = vsel %vm1074_vm8, %v1068_v50, %v1085_v26  ;;  %v1146_v51 = vand.u32 2139095040, %v3808_v40  ;;  %v1079_v47 = vsel %vm1073_vm9, %v1076_v54, %v1078_v12  ;;  %v1083_v5 = vsel %vm1073_vm9, %v1080_v11, %v1082_v41 }
 0x12a   : > { %v1005_v8 = vclz %v3211_v31  ;;  %v1087_v15 = vsel %vm1073_vm9, %v1084_v32, %v1086_v59  ;;  %vm825_vm10 = vcmp.lt.s32.totalorder %v3944_v57, 2  ;;  %v4004_v62 = vsel %vm720_vm2, nan, %v3941_v3 }
 0x12b   : > { %v3995_v53 = vmul.u32.u64.low %v1088_v25, %v1087_v15  ;;  %v3996_v1 = vmul.u32.u64.high %v1088_v25, %v1087_v15, %v3995_v53  ;;  %v3998_v19 = vmul.u32.u64.low %v1088_v25, %v1083_v5  ;;  %v3999_v63 = vmul.u32.u64.high %v1088_v25, %v1083_v5, %v3998_v19 }
 0x12c   : > { %vm4008_vm12 = vcmp.le.f32.partialorder %v937_v16, 0.7853982  ;;  %v3212_v50 = vadd.s32 4294967294, %v1005_v8  ;;  %v5073_v54 = vand.u32 2147483647, %v3808_v40  ;;  %v1147_v12 = vshrl.u32 %v1146_v51, 23 }
 0x12d   : > { %v828_v11 = vsel %vm826_vm4, %v3969_v42, %v5071_v46  ;;  %v831_v3 = vsel %vm829_vm5, %v5070_v28, %v3980_v38  ;;  %v927_v16 = vand.u32 3, %v3963_v61  ;;  %v993_v14 = vadd.s32 %v3886_v55, %v3900_v10 }
 0x12e   : > { %vm823_vm13 = vweird.f32 %v3546_v35  ;;  %vm3213_vm14 = vcmp.lt.s32.totalorder %v3212_v50, 0  ;;  %v1024_v32 = vsel %vm939_vm6, %v1023_v33, %v3954_v34  ;;  %v1095_v26 = vmul.u32 %v1088_v25, %v1079_v47  ;;  %v4030_v41 = vpop.eup %3349 }
 0x12f   : > { %v3218_v31 = vadd.s32 4294967169, %v1147_v12  ;;  %v1008_v59 = vsel %vm3213_vm14, 0, %v3212_v50  ;;  %vm1097_vm15 = vc.u32 %v3996_v1, %v3998_v19  ;;  %v1098_v51 = vadd.s32 1, %v3999_v63  ;;  %v4035_v5 = vpop.eup %3351 }
 0x130   : > { %v1249_v8 = vand.u32 2139095040, %v3812_v37  ;;  %v1009_v55 = vsub.s32 32, %v1008_v59  ;;  %v1013_v10 = vsub.s32 4294967266, %v1008_v59  ;;  %v1150_v15 = vand.u32 8388607, %v5073_v54 }
 0x131   : > { %v5081_v34 = vand.u32 2147483647, %v3812_v37  ;;  %v5079_v25 = vxor.u32 2147483648, %v4030_v41  ;;  %v1010_v33 = vshll.u32 %v3976_v52, %v1008_v59  ;;  %v1099_v47 = vsel %vm1097_vm15, %v1098_v51, %v3999_v63 }
 0x132   : > { %v1153_v53 = vadd.s32 1, %v3218_v31  ;;  %v5080_v50 = vxor.u32 2147483648, %v4035_v5  ;;  %v1011_v12 = vshrl.u32 %v993_v14, %v1009_v55  ;;  %v1014_v28 = vadd.s32 127, %v1013_v10 }
 0x133   : > { %v1100_v46 = vadd.s32 %v1099_v47, %v1095_v26  ;;  %vm929_vm0 = vcmp.eq.s32.totalorder %v927_v16, 0  ;;  %vm932_vm1 = vcmp.eq.s32.totalorder %v927_v16, 2  ;;  %v1250_v27 = vshrl.u32 %v1249_v8, 23 }
 0x134   : > { %vm1154_vm3 = vcmp.gt.s32.totalorder %v1153_v53, 0  ;;  %v832_v54 = vsel %vm825_vm10, %v828_v11, %v831_v3  ;;  %v1012_v13 = vor.u32 %v1011_v12, %v1010_v33  ;;  %v1015_v17 = vshll.u32 %v1014_v28, 23 }
 0x135   : > { %v1101_v6 = vadd.s32 536870912, %v1100_v46  ;;  %v934_v52 = vsel %vm932_vm1, %v5079_v25, %v4035_v5  ;;  %v4051_v63 = vsel %vm4008_vm12, 0, %v1024_v32  ;;  %v1151_v14 = vor.u32 8388608, %v1150_v15 }
 0x136   : > { %v1155_v26 = vsel %vm1154_vm3, %v1153_v53, 0  ;;  %v931_v31 = vsel %vm929_vm0, %v4030_v41, %v5080_v50  ;;  %v1016_v59 = vor.u32 4788187, %v1015_v17  ;;  %v4058_v28 = vand.u32 8388607, %v5081_v34 }
 0x137   : > { %v1102_v57 = vshrl.u32 %v1101_v6, 30  ;;  %v4062_v11 = vsel %vm823_vm13, nan, %v832_v54  ;;  %vm928_vm4 = vcmp.lt.s32.totalorder %v927_v16, 2  ;;  %v1157_v3 = vand.u32 31, %v1155_v26 }
 0x138   : > { %v3222_v32 = vadd.s32 4294967169, %v1250_v27  ;;  %v1017_v51 = vand.u32 2147483647, %v1016_v59  ;;  %v1019_v8 = vcvt.s32.f32 %v1012_v13  ;;  %v4065_v55 = vand.u32 3, %v4051_v63 }
 0x139   : > { %vm1042_vm5 = vcmp.lt.s32.totalorder %v3760_v44, 0  ;;  %v1103_v17 = vshll.u32 %v1102_v57, 30  ;;  %v4068_v6 = vsel %vm928_vm4, %v931_v31, %v934_v52  ;;  %v4071_v10 = vadd.s32 %v3998_v19, %v3996_v1 }
 0x13a   : > { %v1158_v15 = vsub.s32 32, %v1157_v3  ;;  %v4073_v33 = vshll.u32 %v1151_v14, 8  ;;  %v1020_v54 = vmul.f32 %v1019_v8, %v1017_v51  ;;  %v4077_v27 = vshrl.u32 %v1155_v26, 5 }
 0x13b   : > { %v4075_v16 = vsub.s32 %v1100_v46, %v1103_v17  ;;  %v1160_v47 = vshll.u32 %v5090_v60, %v1157_v3  ;;  %v1256_v52 = vadd.s32 1, %v3222_v32  ;;  %v1163_v14 = vshll.u32 %v5082_v0, %v1157_v3 }
 0x13c   : > { %v1161_v53 = vshrl.u32 %v5082_v0, %v1158_v15  ;;  %v1164_v12 = vshrl.u32 %v5086_v2, %v1158_v15  ;;  %v1021_v1 = vxor.u32 2147483648, %v1020_v54  ;;  %v1167_v46 = vshrl.u32 %v5084_v4, %v1158_v15 }
 0x13d   : > { %v1106_v19 = vsub.s32 0, %v4075_v16  ;;  %v1126_v31 = vsub.s32 4, %v1102_v57  ;;  %v1166_v26 = vshll.u32 %v5086_v2, %v1157_v3  ;;  %v1169_v59 = vshll.u32 %v5084_v4, %v1157_v3 }
 0x13e   : > { %v5127_v51 = vmov 920167782   ;;  %v1022_v17 = vsel %vm939_vm6, %v1021_v1, %v1020_v54  ;;  %v1162_v32 = vor.u32 %v1161_v53, %v1160_v47  ;;  %v1165_v50 = vor.u32 %v1164_v12, %v1163_v14 }
 0x13f   : > { %v1170_v8 = vshrl.u32 %v5127_v51, %v1158_v15  ;;  %v3215_v25 = vmin.u32 %v1106_v19, %v4075_v16  ;;  %v1025_v34 = vsel %vm4008_vm12, %v3689_v7, %v1022_v17  ;;  %v1168_v0 = vor.u32 %v1167_v46, %v1166_v26 }
 0x140   : > { %vm1175_vm7 = vcmp.lt.s32.totalorder %v4077_v27, 1  ;;  %3353 = vcosq.f32 %v1025_v34  ;;  %v5128_v4 = vand.u32 2147483647, %v3760_v44  ;;  %v1172_v47 = vshll.u32 %v5127_v51, %v1157_v3 }
 0x141   : > { %v1171_v13 = vor.u32 %v1170_v8, %v1169_v59  ;;  %v1108_v54 = vclz %v3215_v25  ;;  %v5131_v53 = vmov 1326507024   ;;  %vm926_vm6 = vweird.f32 %v3626_v48  ;;  %v4130_v8 = vld [vmem:[%s4127_s30] sm:$0xff] }
 0x142   : > { %vm4099_vm8 = vcmp.le.f32.partialorder %v5128_v4, 0.7853982  ;;  %v1173_v12 = vshrl.u32 %v5131_v53, %v1158_v15  ;;  %3355 = vsinq.f32 %v1025_v34  ;;  %v1127_v18 = vsel %vm1042_vm5, %v1126_v31, %v1102_v57  ;;  %5132 = vst [vmem:[#allocation9_spill] sm:$0xff] %v4130_v8 }
 0x143   : > { %v1159_v1 = vshrl.u32 %v5090_v60, %v1158_v15  ;;  %vm1176_vm9 = vcmp.lt.s32.totalorder %v4077_v27, 2  ;;  %v3216_v4 = vadd.s32 4294967294, %v1108_v54  ;;  %vm1178_vm10 = vcmp.lt.s32.totalorder %v4077_v27, 4 }
 0x144   : > { %v1174_v19 = vor.u32 %v1173_v12, %v1172_v47  ;;  %v1183_v25 = vsel %vm1175_vm7, %v1162_v32, %v1165_v50  ;;  %vm1177_vm12 = vcmp.lt.s32.totalorder %v4077_v27, 3  ;;  %v1180_v34 = vsel %vm1178_vm10, %v1168_v0, 2102212464 }
 0x145   : > { %v1184_v3 = vsel %vm1178_vm10, %v1171_v13, 920167782  ;;  %v1187_v57 = vsel %vm1175_vm7, %v1165_v50, %v1168_v0  ;;  %vm3217_vm14 = vcmp.lt.s32.totalorder %v3216_v4, 0  ;;  %v1179_v15 = vsel %vm1175_vm7, %v1159_v1, %v1162_v32 }
 0x146   : > { %v1185_v14 = vsel %vm1177_vm12, %v1168_v0, %v1184_v3  ;;  %v1188_v46 = vsel %vm1178_vm10, %v1174_v19, 1326507024  ;;  %v1111_v31 = vsel %vm3217_vm14, 0, %v3216_v4  ;;  %vm1257_vm15 = vcmp.gt.s32.totalorder %v1256_v52, 0  ;;  %v4147_v4 = vld [vmem:[%s4127_s30 + $0x8] sm:$0xff] }
 0x147   : > { %v1186_v26 = vsel %vm1176_vm9, %v1183_v25, %v1185_v14  ;;  %v1189_v59 = vsel %vm1177_vm12, %v1171_v13, %v1188_v46  ;;  %vm1035_vm0 = vcmp.eq.s32.totalorder %v4065_v55, 2  ;;  %v1112_v17 = vsub.s32 32, %v1111_v31  ;;  %5133 = vst [vmem:[#allocation10_spill] sm:$0xff] %v4147_v4 }
 0x148   : > { %v1116_v32 = vsub.s32 4294967266, %v1111_v31  ;;  %v1181_v0 = vsel %vm1177_vm12, %v1165_v50, %v1180_v34  ;;  %v1190_v54 = vsel %vm1176_vm9, %v1187_v57, %v1189_v59  ;;  %vm1032_vm1 = vcmp.eq.s32.totalorder %v4065_v55, 0  ;;  %v4165_v59 = vld [vmem:[%s4127_s30 + $0x10] sm:$0xff] }
 0x149   : > { %v4138_v13 = vmul.u32.u64.low %v4073_v33, %v1190_v54  ;;  %v4139_v47 = vmul.u32.u64.high %v4073_v33, %v1190_v54, %v4138_v13  ;;  %v4142_v12 = vmul.u32.u64.low %v4073_v33, %v1186_v26  ;;  %v4143_v1 = vmul.u32.u64.high %v4073_v33, %v1186_v26, %v4142_v12  ;;  %5135 = vst [vmem:[#allocation12_spill] sm:$0xff] %v4165_v59 }
 0x14a   : > { %v1113_v19 = vshll.u32 %v4075_v16, %v1111_v31  ;;  %v1114_v50 = vshrl.u32 %v4071_v10, %v1112_v17  ;;  %v1117_v25 = vadd.s32 127, %v1116_v32  ;;  %v1258_v34 = vsel %vm1257_vm15, %v1256_v52, 0  ;;  %v4162_v26 = vpop.eup %3353 }
 0x14b   : > { %v4154_v3 = vsel %vm4099_vm8, 0, %v1127_v18  ;;  %v1182_v57 = vsel %vm1176_vm9, %v1179_v15, %v1181_v0  ;;  %v1260_v14 = vand.u32 31, %v1258_v34  ;;  %v4160_v46 = vmul.f32 %v3937_v49, %v4130_v8 }
 0x14c   : > { %v4170_v10 = vsel %vm926_vm6, nan, %v4068_v6  ;;  %v1115_v16 = vor.u32 %v1114_v50, %v1113_v19  ;;  %v1118_v52 = vshll.u32 %v1117_v25, 23  ;;  %v5136_v18 = vor.u32 8388608, %v4058_v28  ;;  %v4176_v15 = vpop.eup %3355 }
 0x14d   : > { %5134 = vst [vmem:[#allocation11_spill] sm:$0xff] %v4160_v46  ;;  %v5089_v49 = vxor.u32 2147483648, %v4162_v26  ;;  %vm1200_vm3 = vc.u32 %v4139_v47, %v4142_v12  ;;  %v1201_v31 = vadd.s32 1, %v4143_v1  ;;  %v4184_v17 = vmul.f32 %v4004_v62, %v4147_v4 }
 0x14e   : > { %v4174_v27 = vshll.u32 %v5136_v18, 8  ;;  %vm1031_vm4 = vcmp.lt.s32.totalorder %v4065_v55, 2  ;;  %v1119_v6 = vor.u32 4788187, %v1118_v52  ;;  %v4188_v28 = vand.u32 3, %v4154_v3 }
 0x14f   : > { %5137 = vst [vmem:[#allocation13_spill] sm:$0xff] %v4184_v17  ;;  %v1198_v32 = vmul.u32 %v4073_v33, %v1182_v57  ;;  %v1261_v0 = vsub.s32 32, %v1260_v14  ;;  %v1202_v13 = vsel %vm1200_vm3, %v1201_v31, %v4143_v1  ;;  %v4193_v19 = vshrl.u32 %v1258_v34, 5 }
 0x150   : > { %v4197_v50 = vmul.f32 %v4062_v11, %v4165_v59  ;;  %v1120_v62 = vand.u32 2147483647, %v1119_v6  ;;  %v1122_v25 = vcvt.s32.f32 %v1115_v16  ;;  %vm1145_vm7 = vcmp.lt.s32.totalorder %v3808_v40, 0 }
 0x151   : > { %v1203_v52 = vadd.s32 %v1202_v13, %v1198_v32  ;;  %v1450_v18 = vadd.s32 3, %v3764_v56  ;;  %v1037_v33 = vsel %vm1035_vm0, %v5089_v49, %v4176_v15  ;;  %v1263_v1 = vshll.u32 %v5090_v60, %v1260_v14 }
 0x152   : > { %5138 = vst [vmem:[#allocation14_spill] sm:$0xff] %v4197_v50  ;;  %v5139_v34 = vmov 2475754826   ;;  %v5140_v31 = vmov 2131351028   ;;  %v1123_v54 = vmul.f32 %v1122_v25, %v1120_v62  ;;  %vm1029_vm9 = vweird.f32 %v3689_v7 }
 0x153   : > { %v1264_v57 = vshrl.u32 %v5139_v34, %v1261_v0  ;;  %v1267_v11 = vshrl.u32 %v5140_v31, %v1261_v0  ;;  %v1204_v6 = vadd.s32 536870912, %v1203_v52  ;;  %v1269_v16 = vshll.u32 %v5140_v31, %v1260_v14 }
 0x154   : > { %v5141_v50 = vmov 2102212464   ;;  %v5142_v56 = vxor.u32 2147483648, %v4176_v15  ;;  %v5143_v49 = vand.u32 2147483647, %v3808_v40  ;;  %v1266_v31 = vshll.u32 %v5139_v34, %v1260_v14 }
 0x155   : > { %v1270_v32 = vshrl.u32 %v5141_v50, %v1261_v0  ;;  %v5146_v62 = vmov 683565275   ;;  %v1273_v46 = vshrl.u32 %v5127_v51, %v1261_v0  ;;  %v1124_v17 = vxor.u32 2147483648, %v1123_v54 }
 0x156   : > { %v1034_v13 = vsel %vm1032_vm1, %v4162_v26, %v5142_v56  ;;  %vm4219_vm10 = vcmp.le.f32.partialorder %v5143_v49, 0.7853982  ;;  %v1262_v25 = vshrl.u32 %v5146_v62, %v1261_v0  ;;  %v1205_v43 = vshrl.u32 %v1204_v6, 30 }
 0x157   : > { %v1271_v24 = vor.u32 %v1270_v32, %v1269_v16  ;;  %v1272_v22 = vshll.u32 %v5141_v50, %v1260_v14  ;;  %v1265_v21 = vor.u32 %v1264_v57, %v1263_v1  ;;  %v1268_v20 = vor.u32 %v1267_v11, %v1266_v31  ;;  %v4265_v57 = vld [vmem:[%s4127_s30 + $0x20] sm:$0xff] }
 0x158   : > { %v1275_v56 = vshll.u32 %v5127_v51, %v1260_v14  ;;  %v1276_v49 = vshrl.u32 %v5131_v53, %v1261_v0  ;;  %v1125_v59 = vsel %vm1042_vm5, %v1124_v17, %v1123_v54  ;;  %v1206_v4 = vshll.u32 %v1205_v43, 30 }
 0x159   : > { %v1229_v62 = vsub.s32 4, %v1205_v43  ;;  %v1274_v8 = vor.u32 %v1273_v46, %v1272_v22  ;;  %v1038_v34 = vsel %vm1031_vm4, %v1034_v13, %v1037_v33  ;;  %v1128_v6 = vsel %vm4099_vm8, %v3760_v44, %v1125_v59 }
 0x15a   : > { %v1277_v50 = vor.u32 %v1276_v49, %v1275_v56  ;;  %vm1281_vm12 = vcmp.lt.s32.totalorder %v4193_v19, 4  ;;  %3357 = vcosq.f32 %v1128_v6  ;;  %v4237_v51 = vsub.s32 %v1203_v52, %v1206_v4  ;;  %v4250_v52 = vld [vmem:[%s4127_s30 + $0x18] sm:$0xff] }
 0x15b   : > { %vm1278_vm14 = vcmp.lt.s32.totalorder %v4193_v19, 1  ;;  %v1283_v53 = vsel %vm1281_vm12, %v1271_v24, 2102212464  ;;  %3359 = vsinq.f32 %v1128_v6  ;;  %v1230_v22 = vsel %vm1145_vm7, %v1229_v62, %v1205_v43 }
 0x15c   : > { %vm1280_vm5 = vcmp.lt.s32.totalorder %v4193_v19, 3  ;;  %v1282_v55 = vsel %vm1278_vm14, %v1262_v25, %v1265_v21  ;;  %v1209_v2 = vsub.s32 0, %v4237_v51  ;;  %v1286_v46 = vsel %vm1278_vm14, %v1265_v21, %v1268_v20 }
 0x15d   : > { %v1284_v14 = vsel %vm1280_vm5, %v1268_v20, %v1283_v53  ;;  %v1287_v59 = vsel %vm1281_vm12, %v1274_v8, 920167782  ;;  %v1290_v17 = vsel %vm1278_vm14, %v1268_v20, %v1271_v24  ;;  %v1291_v0 = vsel %vm1281_vm12, %v1277_v50, 1326507024 }
 0x15e   : > { %v1288_v4 = vsel %vm1280_vm5, %v1271_v24, %v1287_v59  ;;  %v1554_v54 = vadd.s32 3, %v3816_v23  ;;  %v1039_v43 = vsel %vm1029_vm9, nan, %v1038_v34  ;;  %vm1138_vm8 = vcmp.eq.s32.totalorder %v4188_v28, 2 }
 0x15f   : > { %v3219_v33 = vmin.u32 %v1209_v2, %v4237_v51  ;;  %v4258_v21 = vsel %vm4219_vm10, 0, %v1230_v22  ;;  %vm1279_vm15 = vcmp.lt.s32.totalorder %v4193_v19, 2  ;;  %vm1135_vm0 = vcmp.eq.s32.totalorder %v4188_v28, 0 }
 0x160   : > { %v1285_v20 = vsel %vm1279_vm15, %v1282_v55, %v1284_v14  ;;  %v1289_v24 = vsel %vm1279_vm15, %v1286_v46, %v1288_v4  ;;  %v1292_v23 = vsel %vm1280_vm5, %v1274_v8, %v1291_v0  ;;  %v1451_v1 = vand.u32 3, %v1450_v18 }
 0x161   : > { %vm1134_vm1 = vcmp.lt.s32.totalorder %v4188_v28, 2  ;;  %v1211_v11 = vclz %v3219_v33  ;;  %v1293_v16 = vsel %vm1279_vm15, %v1290_v17, %v1292_v23  ;;  %v4279_v19 = vmul.f32 %v4170_v10, %v4250_v52 }
 0x162   : > { %v4269_v32 = vmul.u32.u64.low %v4174_v27, %v1289_v24  ;;  %v4270_v13 = vmul.u32.u64.high %v4174_v27, %v1289_v24, %v4269_v32  ;;  %v4274_v25 = vmul.u32.u64.low %v4174_v27, %v1293_v16  ;;  %v4275_v31 = vmul.u32.u64.high %v4174_v27, %v1293_v16, %v4274_v25 }
 0x163   : > { %v1658_v8 = vadd.s32 3, %v3910_v58  ;;  %v1199_v18 = vadd.s32 %v4142_v12, %v4139_v47  ;;  %v3220_v56 = vadd.s32 4294967294, %v1211_v11  ;;  %v4285_v49 = vand.u32 3, %v4258_v21 }
 0x164   : > { %vm1453_vm3 = vcmp.eq.s32.totalorder %v1451_v1, 0  ;;  %v1301_v62 = vmul.u32 %v4174_v27, %v1285_v20  ;;  %v4289_v34 = vmul.f32 %v1039_v43, %v4265_v57  ;;  %vm1452_vm4 = vcmp.lt.s32.totalorder %v1451_v1, 2  ;;  %v4294_v50 = vpop.eup %3357 }
 0x165   : > { %v5147_v6 = vxor.u32 2147483648, %v3801_v36  ;;  %vm1132_vm12 = vweird.f32 %v3760_v44  ;;  %vm3221_vm14 = vcmp.lt.s32.totalorder %v3220_v56, 0  ;;  %v1304_v58 = vadd.s32 1, %v4270_v13  ;;  %v4298_v12 = vpop.eup %3359 }
 0x166   : > { %vm1456_vm5 = vcmp.eq.s32.totalorder %v1451_v1, 2  ;;  %v1555_v47 = vand.u32 3, %v1554_v54  ;;  %v1139_v27 = vxor.u32 2147483648, %v4294_v50  ;;  %v1214_v53 = vsel %vm3221_vm14, 0, %v3220_v56 }
 0x167   : > { %v1455_v10 = vsel %vm1453_vm3, %v3796_v9, %v5147_v6  ;;  %vm1303_vm15 = vc.u32 %v4275_v31, %v4269_v32  ;;  %v5148_v22 = vxor.u32 2147483648, %v3796_v9  ;;  %v1136_v2 = vxor.u32 2147483648, %v4298_v12 }
 0x168   : > { %v1215_v14 = vsub.s32 32, %v1214_v53  ;;  %v1219_v46 = vsub.s32 4294967266, %v1214_v53  ;;  %v1659_v59 = vand.u32 3, %v1658_v8  ;;  %v1140_v4 = vsel %vm1138_vm8, %v1139_v27, %v4298_v12 }
 0x169   : > { %v1458_v55 = vsel %vm1456_vm5, %v5148_v22, %v3801_v36  ;;  %v1216_v17 = vshll.u32 %v4237_v51, %v1214_v53  ;;  %vm1248_vm3 = vcmp.lt.s32.totalorder %v3812_v37, 0  ;;  %v1305_v0 = vsel %vm1303_vm15, %v1304_v58, %v4270_v13  ;;  %v4346_v22 = vld [vmem:[%s4127_s30 + $0x28] sm:$0xff] }
 0x16a   : > { %v1762_v9 = vadd.s32 3, %v3963_v61  ;;  %v1137_v36 = vsel %vm1135_vm0, %v4294_v50, %v1136_v2  ;;  %v1217_v54 = vshrl.u32 %v1199_v18, %v1215_v14  ;;  %v1220_v43 = vadd.s32 127, %v1219_v46 }
 0x16b   : > { %v1306_v33 = vadd.s32 %v1305_v0, %v1301_v62  ;;  %v1141_v20 = vsel %vm1134_vm1, %v1137_v36, %v1140_v4  ;;  %v1459_v51 = vsel %vm1452_vm4, %v1455_v10, %v1458_v55  ;;  %vm1557_vm8 = vcmp.eq.s32.totalorder %v1555_v47, 0 }
 0x16c   : > { %v1866_v24 = vadd.s32 3, %v4051_v63  ;;  %v1218_v23 = vor.u32 %v1217_v54, %v1216_v17  ;;  %v1221_v11 = vshll.u32 %v1220_v43, 23  ;;  %v5149_v61 = vand.u32 2147483647, %v3812_v37 }
 0x16d   : > { %v1307_v13 = vadd.s32 536870912, %v1306_v33  ;;  %vm1560_vm0 = vcmp.eq.s32.totalorder %v1555_v47, 2  ;;  %vm1556_vm5 = vcmp.lt.s32.totalorder %v1555_v47, 2  ;;  %v5152_v28 = vxor.u32 2147483648, %v3878_v45 }
 0x16e   : > { %vm4327_vm14 = vcmp.le.f32.partialorder %v5149_v61, 0.7853982  ;;  %v5153_v25 = vxor.u32 2147483648, %v3855_v39  ;;  %vm1660_vm1 = vcmp.lt.s32.totalorder %v1659_v59, 2  ;;  %v1222_v8 = vor.u32 4788187, %v1221_v11 }
 0x16f   : > { %v1559_v1 = vsel %vm1557_vm8, %v3855_v39, %v5152_v28  ;;  %v1308_v18 = vshrl.u32 %v1307_v13, 30  ;;  %vm1661_vm4 = vcmp.eq.s32.totalorder %v1659_v59, 0  ;;  %vm1664_vm15 = vcmp.eq.s32.totalorder %v1659_v59, 2 }
 0x170   : > { %v1562_v63 = vsel %vm1560_vm0, %v5153_v25, %v3878_v45  ;;  %v1142_v56 = vsel %vm1132_vm12, nan, %v1141_v20  ;;  %v5154_v62 = vxor.u32 2147483648, %v3980_v38  ;;  %v5155_v10 = vxor.u32 2147483648, %v3969_v42 }
 0x171   : > { %v1763_v53 = vand.u32 3, %v1762_v9  ;;  %v1223_v39 = vand.u32 2147483647, %v1222_v8  ;;  %v1225_v45 = vcvt.s32.f32 %v1218_v23  ;;  %v1309_v55 = vshll.u32 %v1308_v18, 30 }
 0x172   : > { %v1663_v6 = vsel %vm1661_vm4, %v3969_v42, %v5154_v62  ;;  %v1666_v58 = vsel %vm1664_vm15, %v5155_v10, %v3980_v38  ;;  %v1332_v14 = vsub.s32 4, %v1308_v18  ;;  %v4350_v46 = vadd.s32 %v4269_v32, %v4275_v31 }
 0x173   : > { %v1460_v4 = vsel %vm617_vm11, nan, %v1459_v51  ;;  %v1563_v17 = vsel %vm1556_vm5, %v1559_v1, %v1562_v63  ;;  %v1667_v0 = vsel %vm1660_vm1, %v1663_v6, %v1666_v58  ;;  %v1226_v42 = vmul.f32 %v1225_v45, %v1223_v39  ;;  %v5161_v6 = vld [vmem:[#allocation10_spill] sm:$0xff]  ;;  %v4424_v39 = vld [vmem:[%s440_s23 + $0x8] sm:$0xff] }
 0x174   : > { %v4356_v38 = vsub.s32 %v1306_v33, %v1309_v55  ;;  %v1333_v9 = vsel %vm1248_vm3, %v1332_v14, %v1308_v18  ;;  %vm1765_vm8 = vcmp.eq.s32.totalorder %v1763_v53, 0  ;;  %v4361_v36 = vmul.f32 %v1142_v56, %v4346_v22  ;;  %v5162_v55 = vld [vmem:[#allocation12_spill] sm:$0xff] }
 0x175   : > { %v5156_v32 = vxor.u32 2147483648, %v4035_v5  ;;  %vm1768_vm0 = vcmp.eq.s32.totalorder %v1763_v53, 2  ;;  %v1867_v29 = vand.u32 3, %v1866_v24  ;;  %v1227_v47 = vxor.u32 2147483648, %v1226_v42 }
 0x176   : > { %v1312_v59 = vsub.s32 0, %v4356_v38  ;;  %v5157_v54 = vxor.u32 2147483648, %v4030_v41  ;;  %v1970_v33 = vadd.s32 3, %v4154_v3  ;;  %v1335_v20 = vsel %vm4327_vm14, 0, %v1333_v9 }
 0x177   : > { %v1767_v31 = vsel %vm1765_vm8, %v4030_v41, %v5156_v32  ;;  %v1564_v51 = vsel %vm720_vm2, nan, %v1563_v17  ;;  %v1668_v23 = vsel %vm823_vm13, nan, %v1667_v0  ;;  %vm1764_vm11 = vcmp.lt.s32.totalorder %v1763_v53, 2  ;;  %v4422_v53 = vld [vmem:[%s440_s23] sm:$0xff]  ;;  %v5164_v32 = vld [vmem:[#allocation5_spill] sm:$0xff] }
 0x178   : > { %v1770_v43 = vsel %vm1768_vm0, %v5157_v54, %v4035_v5  ;;  %v1228_v24 = vsel %vm1145_vm7, %v1227_v47, %v1226_v42  ;;  %v3223_v11 = vmin.u32 %v1312_v59, %v4356_v38  ;;  %vm1869_vm5 = vcmp.eq.s32.totalorder %v1867_v29, 0 }
 0x179   : > { %vm1872_vm1 = vcmp.eq.s32.totalorder %v1867_v29, 2  ;;  %v1231_v41 = vsel %vm4219_vm10, %v3808_v40, %v1228_v24  ;;  %v1771_v5 = vsel %vm1764_vm11, %v1767_v31, %v1770_v43  ;;  %v5158_v30 = vxor.u32 2147483648, %v4176_v15 }
 0x17a   : > { %v5159_v35 = vxor.u32 2147483648, %v4162_v26  ;;  %3361 = vcosq.f32 %v1231_v41  ;;  %v1314_v13 = vclz %v3223_v11  ;;  %vm1868_vm2 = vcmp.lt.s32.totalorder %v1867_v29, 2 }
 0x17b   : > { %v1871_v3 = vsel %vm1869_vm5, %v4162_v26, %v5158_v30  ;;  %v1971_v28 = vand.u32 3, %v1970_v33  ;;  %3363 = vsinq.f32 %v1231_v41  ;;  %v2074_v25 = vadd.s32 3, %v4258_v21  ;;  %v4465_v30 = vld [vmem:[%s379_s24 + $0x28] sm:$0xff] }
 0x17c   : > { %v1874_v61 = vsel %vm1872_vm1, %v5159_v35, %v4176_v15  ;;  %v2178_v60 = vadd.s32 3, %v1335_v20  ;;  %v3224_v63 = vadd.s32 4294967294, %v1314_v13  ;;  %v4391_v8 = vand.u32 3, %v1335_v20 }
 0x17d   : > { %v1875_v1 = vsel %vm1868_vm2, %v1871_v3, %v1874_v61  ;;  %vm1973_vm13 = vcmp.eq.s32.totalorder %v1971_v28, 0  ;;  %vm1976_vm7 = vcmp.eq.s32.totalorder %v1971_v28, 2  ;;  %vm1972_vm10 = vcmp.lt.s32.totalorder %v1971_v28, 2  ;;  %v4473_v28 = vld [vmem:[%s379_s24 + $0x18] sm:$0xff] }
 0x17e   : > { %v1975_v26 = vsel %vm1973_vm13, %v4294_v50, %v1136_v2  ;;  %v1978_v15 = vsel %vm1976_vm7, %v1139_v27, %v4298_v12  ;;  %v4399_v18 = vand.u32 3, %v2074_v25  ;;  %vm1241_vm4 = vcmp.eq.s32.totalorder %v4285_v49, 2  ;;  %v5160_v27 = vld [vmem:[#allocation9_spill] sm:$0xff]  ;;  %v475_v25 = vld [vmem:[%s4127_s30 + $0x30] sm:$0xff] }
 0x17f   : > { %vm3225_vm15 = vcmp.lt.s32.totalorder %v3224_v63, 0  ;;  %v1772_v21 = vsel %vm926_vm6, nan, %v1771_v5  ;;  %v1876_v56 = vsel %vm1029_vm9, nan, %v1875_v1  ;;  %v1979_v2 = vsel %vm1972_vm10, %v1975_v26, %v1978_v15  ;;  %v4463_v5 = vld [vmem:[%s379_s24 + $0x8] sm:$0xff]  ;;  %v4481_v15 = vld [vmem:[%s379_s24 + $0x38] sm:$0xff] }
 0x180   : > { %vm1238_vm8 = vcmp.eq.s32.totalorder %v4285_v49, 0  ;;  %v1317_v50 = vsel %vm3225_vm15, 0, %v3224_v63  ;;  %v4410_v12 = vand.u32 3, %v2178_v60  ;;  %v4413_v62 = vmul.f32 %v1460_v4, %v5160_v27 }
 0x181   : > { %v4416_v10 = vmul.f32 %v1564_v51, %v5161_v6  ;;  %vm1237_vm0 = vcmp.lt.s32.totalorder %v4285_v49, 2  ;;  %v1318_v58 = vsub.s32 32, %v1317_v50  ;;  %v1322_v48 = vsub.s32 4294967266, %v1317_v50  ;;  %v4460_v51 = vld [vmem:[%s379_s24] sm:$0xff] }
 0x182   : > { %v1980_v7 = vsel %vm1132_vm12, nan, %v1979_v2  ;;  %vm2076_vm6 = vcmp.lt.s32.totalorder %v4399_v18, 2  ;;  %vm1235_vm9 = vweird.f32 %v3808_v40  ;;  %v1319_v45 = vshll.u32 %v4356_v38, %v1317_v50  ;;  %v5163_v38 = vld [vmem:[#allocation4_spill] sm:$0xff] }
 0x183   : > { %vm2077_vm11 = vcmp.eq.s32.totalorder %v4399_v18, 0  ;;  %vm2080_vm5 = vcmp.eq.s32.totalorder %v4399_v18, 2  ;;  %v4431_v14 = vmul.f32 %v1668_v23, %v5162_v55  ;;  %v1320_v44 = vshrl.u32 %v4350_v46, %v1318_v58  ;;  %v4490_v6 = vld [vmem:[%s379_s24 + $0x20] sm:$0xff]  ;;  %v4492_v58 = vld [vmem:[%s379_s24 + $0x10] sm:$0xff] }
 0x184   : > { %v1323_v4 = vadd.s32 127, %v1322_v48  ;;  %v4435_v17 = vmul.f32 %v1772_v21, %v4250_v52  ;;  %v4438_v0 = vmul.f32 %v1876_v56, %v4265_v57  ;;  %v4441_v42 = vmul.f32 %v1980_v7, %v4346_v22  ;;  %v3362_v29 = vpop.eup %3361  ;;  %v5165_v57 = vld [vmem:[#allocation6_spill] sm:$0xff] }
 0x185   : > { %v4444_v9 = vsub.s32 4, %v5163_v38  ;;  %v2206_v31 = vrot.slane %v4422_v53, %v5164_v32  ;;  %v2214_v46 = vrot.slane %v4424_v39, %v5164_v32  ;;  %v1321_v47 = vor.u32 %v1320_v44, %v1319_v45  ;;  %v3364_v22 = vpop.eup %3363  ;;  %v4494_v48 = vld [vmem:[%s379_s24 + $0x30] sm:$0xff] }
 0x186   : > { %v1324_v59 = vshll.u32 %v1323_v4, 23  ;;  %v4451_v52 = vsub.s32 5, %v5163_v38  ;;  %v2250_v54 = vrot.slane %v4422_v53, %v5165_v57  ;;  %v1242_v43 = vxor.u32 2147483648, %v3362_v29 }
 0x187   : > { %v2210_v33 = vrot.slane %v4422_v53, %v4444_v9  ;;  %v2218_v20 = vrot.slane %v4424_v39, %v4444_v9  ;;  %v2226_v23 = vrot.slane %v2206_v31, %v5164_v32  ;;  %v1239_v24 = vxor.u32 2147483648, %v3364_v22 }
 0x188   : > { %v1325_v11 = vor.u32 4788187, %v1324_v59  ;;  %v1328_v41 = vcvt.s32.f32 %v1321_v47  ;;  %v2234_v3 = vrot.slane %v2214_v46, %v5164_v32  ;;  %v1243_v35 = vsel %vm1241_vm4, %v1242_v43, %v3364_v22 }
 0x189   : > { %v2082_v61 = vsel %vm2080_vm5, %v1242_v43, %v3364_v22  ;;  %v2230_v13 = vrot.slane %v2210_v33, %v5164_v32  ;;  %v2238_v1 = vrot.slane %v2218_v20, %v5164_v32  ;;  %v1240_v60 = vsel %vm1238_vm8, %v3362_v29, %v1239_v24 }
 0x18a   : > { %v1326_v63 = vand.u32 2147483647, %v1325_v11  ;;  %v2079_v26 = vsel %vm2077_vm11, %v3362_v29, %v1239_v24  ;;  %v2239_v21 = vmul.f32 %v2226_v23, %v4460_v51  ;;  %v1244_v56 = vsel %vm1237_vm0, %v1240_v60, %v1243_v35 }
 0x18b   : > { %v2083_v2 = vsel %vm2076_vm6, %v2079_v26, %v2082_v61  ;;  %v2240_v50 = vmul.f32 %v2230_v13, %v4463_v5  ;;  %v2244_v27 = vmul.f32 %v2230_v13, %v4465_v30  ;;  %v1245_v7 = vsel %vm1235_vm9, nan, %v1244_v56 }
 0x18c   : > { %v1329_v45 = vmul.f32 %v1328_v41, %v1326_v63  ;;  %v2084_v49 = vsel %vm1235_vm9, nan, %v2083_v2  ;;  %v2242_v18 = vmul.f32 %v2238_v1, %v4473_v28  ;;  %v4501_v55 = vmul.f32 %v1245_v7, %v475_v25  ;;  %v5166_v7 = vld [vmem:[#allocation7_spill] sm:$0xff] }
 0x18d   : > { %v4503_v44 = vmul.f32 %v2084_v49, %v475_v25  ;;  %v2380_v4 = vpack.c.bf16 %v2244_v27, %v2240_v50  ;;  %v2246_v31 = vmul.f32 %v2238_v1, %v4481_v15  ;;  %v2243_v29 = vmul.f32 %v2226_v23, %v4490_v6 }
 0x18e   : > { %v1330_v46 = vxor.u32 2147483648, %v1329_v45  ;;  %v2241_v47 = vmul.f32 %v2234_v3, %v4492_v58  ;;  %v2245_v59 = vmul.f32 %v2234_v3, %v4494_v48  ;;  %v2254_v40 = vrot.slane %v4422_v53, %v4451_v52 }
 0x18f   : > { %2724 = vmatprep.subr.bf16.mxu0 %v2380_v4  ;;  %v2382_v22 = vpack.c.bf16 %v2246_v31, %v2242_v18  ;;  %v2262_v43 = vrot.slane %v4424_v39, %v4451_v52  ;;  %v2270_v33 = vrot.slane %v2250_v54, %v5165_v57  ;;  %v2379_v24 = vpack.c.bf16 %v2243_v29, %v2239_v21 }
 0x190   : > { %v1331_v20 = vsel %vm1248_vm3, %v1330_v46, %v1329_v45  ;;  %v2381_v11 = vpack.c.bf16 %v2245_v59, %v2241_v47  ;;  %v2258_v23 = vrot.slane %v4424_v39, %v5165_v57  ;;  %v2274_v3 = vrot.slane %v2254_v40, %v5165_v57  ;;  %v5167_v59 = vld [vmem:[#allocation8_spill] sm:$0xff] }
 0x191   : > { %v1334_v41 = vsel %vm4327_vm14, %v3812_v37, %v1331_v20  ;;  %2767 = vmatprep.subr.bf16.mxu1 %v2382_v22  ;;  %v2282_v35 = vrot.slane %v2262_v43, %v5165_v57  ;;  %v2283_v61 = vmul.f32 %v2270_v33, %v4460_v51  ;;  %2725 = vmatpush1.bf16.msra.mxu0 %v2379_v24  ;;  %v4527_v1 = vsub.s32 6, %v5163_v38 }
 0x192   : > { %3365 = vcosq.f32 %v1334_v41  ;;  %2768 = vmatpush1.bf16.msra.mxu1 %v2381_v11  ;;  %v2287_v54 = vmul.f32 %v2270_v33, %v4490_v6  ;;  %v2278_v13 = vrot.slane %v2258_v23, %v5165_v57  ;;  %v2284_v16 = vmul.f32 %v2274_v3, %v4463_v5 }
 0x193   : > { %3367 = vsinq.f32 %v1334_v41  ;;  %v2288_v25 = vmul.f32 %v2274_v3, %v4465_v30  ;;  %v2286_v60 = vmul.f32 %v2282_v35, %v4473_v28  ;;  %v2290_v63 = vmul.f32 %v2282_v35, %v4481_v15 }
 0x194   : > { %v2383_v26 = vpack.c.bf16 %v2287_v54, %v2283_v61  ;;  %v2285_v21 = vmul.f32 %v2278_v13, %v4492_v58  ;;  %v2289_v56 = vmul.f32 %v2278_v13, %v4494_v48  ;;  %v2298_v50 = vrot.slane %v4422_v53, %v4527_v1 }
 0x195   : > { %v2384_v2 = vpack.c.bf16 %v2288_v25, %v2284_v16  ;;  %v2306_v27 = vrot.slane %v4424_v39, %v4527_v1  ;;  %v2294_v45 = vrot.slane %v4422_v53, %v5166_v7  ;;  %vm1344_vm12 = vcmp.eq.s32.totalorder %v4391_v8, 2 }
 0x196   : > { %v2386_v49 = vpack.c.bf16 %v2290_v63, %v2286_v60  ;;  %v2385_v18 = vpack.c.bf16 %v2289_v56, %v2285_v21  ;;  %v2302_v4 = vrot.slane %v4424_v39, %v5166_v7  ;;  %v4545_v31 = vsub.s32 7, %v5163_v38 }
 0x197   : > { %vm1341_vm3 = vcmp.eq.s32.totalorder %v4391_v8, 0  ;;  %vm2181_vm14 = vcmp.eq.s32.totalorder %v4410_v12, 0  ;;  %2726 = vmatprep.subr.bf16.mxu0 %v2384_v2  ;;  %v2318_v46 = vrot.slane %v2298_v50, %v5166_v7  ;;  %v2326_v29 = vrot.slane %v2306_v27, %v5166_v7 }
 0x198   : > { %v2314_v47 = vrot.slane %v2294_v45, %v5166_v7  ;;  %v2338_v22 = vrot.slane %v4422_v53, %v5167_v59  ;;  %vm1340_vm1 = vcmp.lt.s32.totalorder %v4391_v8, 2  ;;  %vm2180_vm2 = vcmp.lt.s32.totalorder %v4410_v12, 2  ;;  %2769 = vmatprep.subr.bf16.mxu1 %v2386_v49  ;;  %2727 = vmatpush1.bf16.msra.mxu0 %v2383_v26 }
 0x199   : > { %vm2184_vm13 = vcmp.eq.s32.totalorder %v4410_v12, 2  ;;  %v2322_v40 = vrot.slane %v2302_v4, %v5166_v7  ;;  %v2342_v43 = vrot.slane %v4422_v53, %v4545_v31  ;;  %v2350_v33 = vrot.slane %v4424_v39, %v4545_v31  ;;  %2770 = vmatpush1.bf16.msra.mxu1 %v2385_v18 }
 0x19a   : > { %vm1338_vm7 = vweird.f32 %v3812_v37  ;;  %v2328_v20 = vmul.f32 %v2318_v46, %v4463_v5  ;;  %v2332_v24 = vmul.f32 %v2318_v46, %v4465_v30  ;;  %v2330_v11 = vmul.f32 %v2326_v29, %v4473_v28 }
 0x19b   : > { %v2334_v23 = vmul.f32 %v2326_v29, %v4481_v15  ;;  %v2327_v41 = vmul.f32 %v2314_v47, %v4460_v51  ;;  %v2331_v3 = vmul.f32 %v2314_v47, %v4490_v6  ;;  %v2329_v53 = vmul.f32 %v2322_v40, %v4492_v58  ;;  %v4591_v47 = vld [vmem:[%s447_s11 + $0x8] sm:$0xff] }
 0x19c   : > { %v2333_v35 = vmul.f32 %v2322_v40, %v4494_v48  ;;  %vm2720_vm10 = vcmask 523264   ;;  %v2388_v61 = vpack.c.bf16 %v2332_v24, %v2328_v20  ;;  %v2362_v13 = vrot.slane %v2342_v43, %v5167_v59  ;;  %v3366_v25 = vpop.eup %3365  ;;  %v4596_v40 = vld [vmem:[%s447_s11] sm:$0xff] }
 0x19d   : > { %v2390_v54 = vpack.c.bf16 %v2334_v23, %v2330_v11  ;;  %v2370_v16 = vrot.slane %v2350_v33, %v5167_v59  ;;  %v2387_v60 = vpack.c.bf16 %v2331_v3, %v2327_v41  ;;  %v2358_v26 = vrot.slane %v2338_v22, %v5167_v59  ;;  %v3368_v56 = vpop.eup %3367  ;;  %v476_v22 = vld [vmem:[%s4127_s30 + $0x38] sm:$0xff]  ;;  %v4602_v33 = vld [vmem:[%s447_s11 + $0x10] sm:$0xff] }
 0x19e   : > { %v2389_v63 = vpack.c.bf16 %v2333_v35, %v2329_v53  ;;  %v2346_v21 = vrot.slane %v4424_v39, %v5167_v59  ;;  %v1345_v2 = vxor.u32 2147483648, %v3366_v25  ;;  %2728 = vmatprep.subr.bf16.mxu0 %v2388_v61  ;;  %v2372_v50 = vmul.f32 %v2362_v13, %v4463_v5  ;;  %v3333_v41 = vld [vmem:[%s5063_s6] sm:$0x3f]  }
 0x19f   : > { %2771 = vmatprep.subr.bf16.mxu1 %v2390_v54  ;;  %v2376_v27 = vmul.f32 %v2362_v13, %v4465_v30  ;;  %v2374_v45 = vmul.f32 %v2370_v16, %v4473_v28  ;;  %v1342_v49 = vxor.u32 2147483648, %v3368_v56  ;;  %2729 = vmatpush1.bf16.msra.mxu0 %v2387_v60  ;;  %v2378_v18 = vmul.f32 %v2370_v16, %v4481_v15  ;;  %v4593_v28 = vld [vmem:[%s447_s11 + $0x18] sm:$0xff]  ;;  %v5168_v54 = vld [vmem:[#allocation13_spill] sm:$0xff] }
 0x1a0   : > { %2772 = vmatpush1.bf16.msra.mxu1 %v2389_v63  ;;  %v2371_v4 = vmul.f32 %v2358_v26, %v4460_v51  ;;  %v2375_v39 = vmul.f32 %v2358_v26, %v4490_v6  ;;  %v1346_v46 = vsel %vm1344_vm12, %v1345_v2, %v3368_v56  ;;  %v2186_v29 = vsel %vm2184_vm13, %v1345_v2, %v3368_v56  ;;  %v5169_v26 = vld [vmem:[#allocation11_spill] sm:$0xff] }
 0x1a1   : > { %v2392_v5 = vpack.c.bf16 %v2376_v27, %v2372_v50  ;;  %v2366_v30 = vrot.slane %v2346_v21, %v5167_v59  ;;  %v1343_v51 = vsel %vm1341_vm3, %v3366_v25, %v1342_v49  ;;  %v2183_v15 = vsel %vm2181_vm14, %v3366_v25, %v1342_v49  ;;  %v5170_v50 = vld [vmem:[#allocation14_spill] sm:$0xff] }
 0x1a2   : > { %v2394_v6 = vpack.c.bf16 %v2378_v18, %v2374_v45  ;;  %v2391_v43 = vpack.c.bf16 %v2375_v39, %v2371_v4  ;;  %v1347_v20 = vsel %vm1340_vm1, %v1343_v51, %v1346_v46  ;;  %v2187_v24 = vsel %vm2180_vm2, %v2183_v15, %v2186_v29 }
 0x1a3   : > { %2730 = vmatprep.subr.bf16.mxu0 %v2392_v5  ;;  %v2373_v11 = vmul.f32 %v2366_v30, %v4492_v58  ;;  %v2377_v23 = vmul.f32 %v2366_v30, %v4494_v48  ;;  %v1348_v3 = vsel %vm1338_vm7, nan, %v1347_v20  ;;  %v2188_v53 = vsel %vm1338_vm7, nan, %v2187_v24  ;;  %v3336_v58 = vld [vmem:[%s5064_s7 + $0x4] ss:$8 sps:$4 sm:$0x3f]  }
 0x1a4   : > { %2773 = vmatprep.subr.bf16.mxu1 %v2394_v6  ;;  %2731 = vmatpush1.bf16.msra.mxu0 %v2391_v43  ;;  %v4619_v8 = vrot.slane %v4591_v47, %v5164_v32  ;;  %v4623_v12 = vrot.slane %v4593_v28, %v5164_v32  ;;  %v4628_v48 = vmul.f32 %v1348_v3, %v476_v22  ;;  %vm2914_vm4 = vcmask 1045504  }
 0x1a5   : > { %v4630_v35 = vmul.f32 %v2188_v53, %v476_v22  ;;  %v2393_v37 = vpack.c.bf16 %v2377_v23, %v2373_v11  ;;  %v4634_v61 = vrot.slane %v4596_v40, %v5164_v32  ;;  %v4644_v60 = vrot.slane %v4602_v33, %v5164_v32 }
 0x1a6   : > { %v2412_v13 = vmul.f32 %v4619_v8, %v5168_v54  ;;  %v2416_v16 = vmul.f32 %v4619_v8, %v4361_v36  ;;  %v2414_v25 = vmul.f32 %v4623_v12, %v4279_v19  ;;  %v2418_v63 = vmul.f32 %v4623_v12, %v4628_v48 }
 0x1a7   : > { %2774 = vmatpush1.bf16.msra.mxu1 %v2393_v37  ;;  %3259 = vmatmul.mubr.msk.bf16.vlgmr.msra.gmra.mrb[0].mxu0 %vm2720_vm10, %v3333_v41  ;;  %v2411_v21 = vmul.f32 %v4634_v61, %v5169_v26  ;;  %v2415_v56 = vmul.f32 %v4634_v61, %v4289_v34  ;;  %v2413_v27 = vmul.f32 %v4644_v60, %v5170_v50  ;;  %vm2985_vm15 = vcmask 1041408  }
 0x1a8   : > { %v2652_v2 = vpack.c.bf16 %v2416_v16, %v2412_v13  ;;  %v2417_v32 = vmul.f32 %v4644_v60, %v4501_v55  ;;  %v4659_v45 = vrot.slane %v4591_v47, %v5165_v57  ;;  %2852 = vmatprep.mubr.bf16.mxu0 %v3336_v58  ;;  %v2654_v49 = vpack.c.bf16 %v2418_v63, %v2414_v25 }
 0x1a9   : > { %v2651_v18 = vpack.c.bf16 %v2415_v56, %v2411_v21  ;;  %v4663_v4 = vrot.slane %v4593_v28, %v5165_v57  ;;  %v4667_v39 = vrot.slane %v4596_v40, %v5165_v57  ;;  %v4684_v43 = vrot.slane %v4602_v33, %v5165_v57 }
 0x1aa   : > { %3260 = vmatmul.mubr.msk.bf16.vlgmr.msra.gmra.mrb[0].mxu1 %vm2720_vm10, %v3333_v41  ;;  %2820 = vmatprep.subr.bf16.mxu0 %v2652_v2  ;;  %v2653_v46 = vpack.c.bf16 %v2417_v32, %v2413_v27  ;;  %v2436_v29 = vmul.f32 %v4659_v45, %v5168_v54  ;;  %v2440_v5 = vmul.f32 %v4659_v45, %v4361_v36 }
 0x1ab   : > { %2863 = vmatprep.subr.bf16.mxu1 %v2654_v49  ;;  %2821 = vmatpush1.bf16.msra.mxu0 %v2651_v18  ;;  %v2438_v30 = vmul.f32 %v4663_v4, %v4279_v19  ;;  %v2442_v22 = vmul.f32 %v4663_v4, %v4628_v48  ;;  %v2435_v51 = vmul.f32 %v4667_v39, %v5169_v26 }
 0x1ac   : > { %2864 = vmatpush1.bf16.msra.mxu1 %v2653_v46  ;;  %v2656_v15 = vpack.c.bf16 %v2440_v5, %v2436_v29  ;;  %v2439_v6 = vmul.f32 %v4667_v39, %v4289_v34  ;;  %v4688_v20 = vrot.slane %v4591_v47, %v5166_v7  ;;  %v4692_v11 = vrot.slane %v4593_v28, %v5166_v7 }
 0x1ad   : > { %v2658_v24 = vpack.c.bf16 %v2442_v22, %v2438_v30  ;;  %v4696_v23 = vrot.slane %v4596_v40, %v5166_v7  ;;  %v4700_v41 = vrot.slane %v4602_v33, %v5166_v7  ;;  %2895 = vmatprep.mubr.bf16.mxu1 %v3336_v58  ;;  %v2437_v3 = vmul.f32 %v4684_v43, %v5170_v50 }
 0x1ae   : > { %2822 = vmatprep.subr.bf16.mxu0 %v2656_v15  ;;  %v2655_v57 = vpack.c.bf16 %v2439_v6, %v2435_v51  ;;  %v2441_v53 = vmul.f32 %v4684_v43, %v4501_v55  ;;  %v2460_v37 = vmul.f32 %v4688_v20, %v5168_v54  ;;  %v2464_v13 = vmul.f32 %v4688_v20, %v4361_v36 }
 0x1af   : > { %2865 = vmatprep.subr.bf16.mxu1 %v2658_v24  ;;  %v2462_v7 = vmul.f32 %v4692_v11, %v4279_v19  ;;  %v2466_v58 = vmul.f32 %v4692_v11, %v4628_v48  ;;  %v2459_v16 = vmul.f32 %v4696_v23, %v5169_v26  ;;  %v2463_v63 = vmul.f32 %v4696_v23, %v4289_v34 }
 0x1b0   : > { %2823 = vmatpush1.bf16.msra.mxu0 %v2655_v57  ;;  %v2657_v25 = vpack.c.bf16 %v2441_v53, %v2437_v3  ;;  %v2461_v21 = vmul.f32 %v4700_v41, %v5170_v50  ;;  %v2465_v56 = vmul.f32 %v4700_v41, %v4501_v55  ;;  %v2660_v2 = vpack.c.bf16 %v2464_v13, %v2460_v37 }
 0x1b1   : > { %v2662_v27 = vpack.c.bf16 %v2466_v58, %v2462_v7  ;;  %v4724_v32 = vrot.slane %v4591_v47, %v5167_v59  ;;  %v4728_v49 = vrot.slane %v4593_v28, %v5167_v59  ;;  %v2659_v18 = vpack.c.bf16 %v2463_v63, %v2459_v16 }
 0x1b2   : > { %2866 = vmatpush1.bf16.msra.mxu1 %v2657_v25  ;;  %v2661_v46 = vpack.c.bf16 %v2465_v56, %v2461_v21  ;;  %v4732_v29 = vrot.slane %v4596_v40, %v5167_v59  ;;  %v4736_v5 = vrot.slane %v4602_v33, %v5167_v59  ;;  %2824 = vmatprep.subr.bf16.mxu0 %v2660_v2 }
 0x1b3   : > { %2867 = vmatprep.subr.bf16.mxu1 %v2662_v27  ;;  %v2484_v30 = vmul.f32 %v4724_v32, %v5168_v54  ;;  %v2488_v22 = vmul.f32 %v4724_v32, %v4361_v36  ;;  %v2486_v51 = vmul.f32 %v4728_v49, %v4279_v19  ;;  %v2490_v15 = vmul.f32 %v4728_v49, %v4628_v48 }
 0x1b4   : > { %2825 = vmatpush1.bf16.msra.mxu0 %v2659_v18  ;;  %v2483_v6 = vmul.f32 %v4732_v29, %v5169_v26  ;;  %v2487_v59 = vmul.f32 %v4732_v29, %v4289_v34  ;;  %v2485_v24 = vmul.f32 %v4736_v5, %v5170_v50  ;;  %v2489_v3 = vmul.f32 %v4736_v5, %v4501_v55 }
 0x1b5   : > { %v2664_v57 = vpack.c.bf16 %v2488_v22, %v2484_v30  ;;  %v4756_v53 = vrot.slane %v4591_v47, %v4444_v9  ;;  %v4760_v37 = vrot.slane %v4593_v28, %v4444_v9  ;;  %v2666_v13 = vpack.c.bf16 %v2490_v15, %v2486_v51 }
 0x1b6   : > { %2868 = vmatpush1.bf16.msra.mxu1 %v2661_v46  ;;  %v2663_v7 = vpack.c.bf16 %v2487_v59, %v2483_v6  ;;  %v4764_v58 = vrot.slane %v4596_v40, %v4444_v9  ;;  %v4768_v16 = vrot.slane %v4602_v33, %v4444_v9  ;;  %v2665_v25 = vpack.c.bf16 %v2489_v3, %v2485_v24 }
 0x1b7   : > { %2826 = vmatprep.subr.bf16.mxu0 %v2664_v57  ;;  %v2508_v63 = vmul.f32 %v4756_v53, %v5168_v54  ;;  %v2512_v21 = vmul.f32 %v4756_v53, %v4361_v36  ;;  %v2510_v56 = vmul.f32 %v4760_v37, %v4279_v19  ;;  %2869 = vmatprep.subr.bf16.mxu1 %v2666_v13 }
 0x1b8   : > { %2827 = vmatpush1.bf16.msra.mxu0 %v2663_v7  ;;  %v2514_v2 = vmul.f32 %v4760_v37, %v4628_v48  ;;  %v2507_v9 = vmul.f32 %v4764_v58, %v5169_v26  ;;  %v2511_v27 = vmul.f32 %v4764_v58, %v4289_v34  ;;  %v2509_v46 = vmul.f32 %v4768_v16, %v5170_v50 }
 0x1b9   : > { %v2668_v18 = vpack.c.bf16 %v2512_v21, %v2508_v63  ;;  %v2513_v30 = vmul.f32 %v4768_v16, %v4501_v55  ;;  %v4788_v22 = vrot.slane %v4591_v47, %v4451_v52  ;;  %v4792_v6 = vrot.slane %v4593_v28, %v4451_v52 }
 0x1ba   : > { %2870 = vmatpush1.bf16.msra.mxu1 %v2665_v25  ;;  %v2670_v51 = vpack.c.bf16 %v2514_v2, %v2510_v56  ;;  %v2667_v15 = vpack.c.bf16 %v2511_v27, %v2507_v9  ;;  %v4796_v59 = vrot.slane %v4596_v40, %v4451_v52  ;;  %v4804_v13 = vrot.slane %v4602_v33, %v4451_v52 }
 0x1bb   : > { %2828 = vmatprep.subr.bf16.mxu0 %v2668_v18  ;;  %v2669_v24 = vpack.c.bf16 %v2513_v30, %v2509_v46  ;;  %v2532_v57 = vmul.f32 %v4788_v22, %v5168_v54  ;;  %v2536_v3 = vmul.f32 %v4788_v22, %v4361_v36  ;;  %v2534_v7 = vmul.f32 %v4792_v6, %v4279_v19 }
 0x1bc   : > { %2871 = vmatprep.subr.bf16.mxu1 %v2670_v51  ;;  %2829 = vmatpush1.bf16.msra.mxu0 %v2667_v15  ;;  %v2538_v25 = vmul.f32 %v4792_v6, %v4628_v48  ;;  %v2531_v63 = vmul.f32 %v4796_v59, %v5169_v26  ;;  %v2535_v56 = vmul.f32 %v4796_v59, %v4289_v34 }
 0x1bd   : > { %v2672_v21 = vpack.c.bf16 %v2536_v3, %v2532_v57  ;;  %v2533_v2 = vmul.f32 %v4804_v13, %v5170_v50  ;;  %v2537_v52 = vmul.f32 %v4804_v13, %v4501_v55  ;;  %v4820_v27 = vrot.slane %v4591_v47, %v4527_v1 }
 0x1be   : > { %2872 = vmatpush1.bf16.msra.mxu1 %v2669_v24  ;;  %v2674_v9 = vpack.c.bf16 %v2538_v25, %v2534_v7  ;;  %v4824_v18 = vrot.slane %v4593_v28, %v4527_v1  ;;  %v4828_v46 = vrot.slane %v4596_v40, %v4527_v1  ;;  %v2671_v30 = vpack.c.bf16 %v2535_v56, %v2531_v63 }
 0x1bf   : > { %2830 = vmatprep.subr.bf16.mxu0 %v2672_v21  ;;  %v2673_v51 = vpack.c.bf16 %v2537_v52, %v2533_v2  ;;  %v4832_v15 = vrot.slane %v4602_v33, %v4527_v1  ;;  %v4836_v24 = vrot.slane %v4591_v47, %v4545_v31  ;;  %v2556_v57 = vmul.f32 %v4820_v27, %v5168_v54 }
 0x1c0   : > { %5171 = vst [vmem:[#allocation9_spill] sm:$0xff] %v4824_v18  ;;  %5172 = vst [vmem:[#allocation10_spill] sm:$0xff] %v4828_v46  ;;  %2873 = vmatprep.subr.bf16.mxu1 %v2674_v9  ;;  %v2560_v3 = vmul.f32 %v4820_v27, %v4361_v36  ;;  %v2558_v7 = vmul.f32 %v4824_v18, %v4279_v19  ;;  %v2562_v25 = vmul.f32 %v4824_v18, %v4628_v48 }
 0x1c1   : > { %2831 = vmatpush1.bf16.msra.mxu0 %v2671_v30  ;;  %v2555_v1 = vmul.f32 %v4828_v46, %v5169_v26  ;;  %v2559_v47 = vmul.f32 %v4828_v46, %v4289_v34  ;;  %v2557_v63 = vmul.f32 %v4832_v15, %v5170_v50  ;;  %v2561_v21 = vmul.f32 %v4832_v15, %v4501_v55 }
 0x1c2   : > { %2874 = vmatpush1.bf16.msra.mxu1 %v2673_v51  ;;  %v2676_v56 = vpack.c.bf16 %v2560_v3, %v2556_v57  ;;  %v2678_v2 = vpack.c.bf16 %v2562_v25, %v2558_v7  ;;  %v2580_v52 = vmul.f32 %v4836_v24, %v5168_v54  ;;  %v2584_v9 = vmul.f32 %v4836_v24, %v4361_v36 }
 0x1c3   : > { %v2675_v30 = vpack.c.bf16 %v2559_v47, %v2555_v1  ;;  %v2677_v38 = vpack.c.bf16 %v2561_v21, %v2557_v63  ;;  %v4860_v46 = vrot.slane %v4593_v28, %v4545_v31  ;;  %v4864_v18 = vrot.slane %v4596_v40, %v4545_v31 }
 0x1c4   : > { %2832 = vmatprep.subr.bf16.mxu0 %v2676_v56  ;;  %2875 = vmatprep.subr.bf16.mxu1 %v2678_v2  ;;  %v2680_v51 = vpack.c.bf16 %v2584_v9, %v2580_v52  ;;  %v4868_v57 = vrot.slane %v4602_v33, %v4545_v31  ;;  %v2588_v36 = vmul.f32 %v4619_v8, %v4416_v10 }
 0x1c5   : > { %2833 = vmatpush1.bf16.msra.mxu0 %v2675_v30  ;;  %v2582_v54 = vmul.f32 %v4860_v46, %v4279_v19  ;;  %v2586_v28 = vmul.f32 %v4860_v46, %v4628_v48  ;;  %v2579_v40 = vmul.f32 %v4864_v18, %v5169_v26  ;;  %v2583_v3 = vmul.f32 %v4864_v18, %v4289_v34 }
 0x1c6   : > { %2876 = vmatpush1.bf16.msra.mxu1 %v2677_v38  ;;  %2834 = vmatprep.subr.bf16.mxu0 %v2680_v51  ;;  %v2581_v31 = vmul.f32 %v4868_v57, %v5170_v50  ;;  %v2585_v33 = vmul.f32 %v4868_v57, %v4501_v55  ;;  %v2592_v19 = vmul.f32 %v4619_v8, %v4441_v42 }
 0x1c7   : > { %v2682_v7 = vpack.c.bf16 %v2586_v28, %v2582_v54  ;;  %v2679_v25 = vpack.c.bf16 %v2583_v3, %v2579_v40  ;;  %v2590_v48 = vmul.f32 %v4623_v12, %v4435_v17  ;;  %v2594_v26 = vmul.f32 %v4623_v12, %v4630_v35 }
 0x1c8   : > { %v2681_v34 = vpack.c.bf16 %v2585_v33, %v2581_v31  ;;  %v2684_v38 = vpack.c.bf16 %v2592_v19, %v2588_v36  ;;  %v2591_v1 = vmul.f32 %v4634_v61, %v4438_v0  ;;  %v2587_v55 = vmul.f32 %v4634_v61, %v4413_v62 }
 0x1c9   : > { %2877 = vmatprep.subr.bf16.mxu1 %v2682_v7  ;;  %2835 = vmatpush1.bf16.msra.mxu0 %v2679_v25  ;;  %v2686_v50 = vpack.c.bf16 %v2594_v26, %v2590_v48  ;;  %v2593_v8 = vmul.f32 %v4644_v60, %v4503_v44  ;;  %v2589_v47 = vmul.f32 %v4644_v60, %v4431_v14 }
 0x1ca   : > { %2878 = vmatpush1.bf16.msra.mxu1 %v2681_v34  ;;  %2836 = vmatprep.subr.bf16.mxu0 %v2684_v38  ;;  %v2596_v12 = vmul.f32 %v4659_v45, %v4416_v10  ;;  %v2600_v63 = vmul.f32 %v4659_v45, %v4441_v42  ;;  %v2683_v21 = vpack.c.bf16 %v2591_v1, %v2587_v55 }
 0x1cb   : > { %2879 = vmatprep.subr.bf16.mxu1 %v2686_v50  ;;  %v2598_v56 = vmul.f32 %v4663_v4, %v4435_v17  ;;  %v2602_v61 = vmul.f32 %v4663_v4, %v4630_v35  ;;  %v2685_v2 = vpack.c.bf16 %v2593_v8, %v2589_v47  ;;  %v2599_v9 = vmul.f32 %v4667_v39, %v4438_v0 }
 0x1cc   : > { %v2688_v52 = vpack.c.bf16 %v2600_v63, %v2596_v12  ;;  %v2601_v60 = vmul.f32 %v4684_v43, %v4503_v44  ;;  %v2595_v45 = vmul.f32 %v4667_v39, %v4413_v62  ;;  %v2608_v51 = vmul.f32 %v4688_v20, %v4441_v42 }
 0x1cd   : > { %2837 = vmatpush1.bf16.msra.mxu0 %v2683_v21  ;;  %v2690_v30 = vpack.c.bf16 %v2602_v61, %v2598_v56  ;;  %v2597_v4 = vmul.f32 %v4684_v43, %v4431_v14  ;;  %v2604_v36 = vmul.f32 %v4688_v20, %v4416_v10  ;;  %v2610_v54 = vmul.f32 %v4692_v11, %v4630_v35 }
 0x1ce   : > { %2880 = vmatpush1.bf16.msra.mxu1 %v2685_v2  ;;  %2838 = vmatprep.subr.bf16.mxu0 %v2688_v52  ;;  %v2687_v28 = vpack.c.bf16 %v2599_v9, %v2595_v45  ;;  %v2606_v40 = vmul.f32 %v4692_v11, %v4435_v17  ;;  %v2607_v39 = vmul.f32 %v4696_v23, %v4438_v0 }
 0x1cf   : > { %2881 = vmatprep.subr.bf16.mxu1 %v2690_v30  ;;  %v2689_v3 = vpack.c.bf16 %v2601_v60, %v2597_v4  ;;  %v2692_v31 = vpack.c.bf16 %v2608_v51, %v2604_v36  ;;  %v2609_v33 = vmul.f32 %v4700_v41, %v4503_v44  ;;  %v2616_v43 = vmul.f32 %v4724_v32, %v4441_v42  ;;  %v5173_v36 = vld [vmem:[#allocation9_spill] sm:$0xff] }
 0x1d0   : > { %v2694_v20 = vpack.c.bf16 %v2610_v54, %v2606_v40  ;;  %v2603_v19 = vmul.f32 %v4696_v23, %v4413_v62  ;;  %v2618_v7 = vmul.f32 %v4728_v49, %v4630_v35  ;;  %v2605_v11 = vmul.f32 %v4700_v41, %v4431_v14 }
 0x1d1   : > { %2839 = vmatpush1.bf16.msra.mxu0 %v2687_v28  ;;  %v2612_v25 = vmul.f32 %v4724_v32, %v4416_v10  ;;  %v2614_v26 = vmul.f32 %v4728_v49, %v4435_v17  ;;  %v2615_v34 = vmul.f32 %v4732_v29, %v4438_v0  ;;  %v2617_v1 = vmul.f32 %v4736_v5, %v4503_v44 }
 0x1d2   : > { %2882 = vmatpush1.bf16.msra.mxu1 %v2689_v3  ;;  %2840 = vmatprep.subr.bf16.mxu0 %v2692_v31  ;;  %v2691_v48 = vpack.c.bf16 %v2607_v39, %v2603_v19  ;;  %v2693_v23 = vpack.c.bf16 %v2609_v33, %v2605_v11  ;;  %v2624_v50 = vmul.f32 %v4756_v53, %v4441_v42  ;;  %v5174_v3 = vld [vmem:[#allocation10_spill] sm:$0xff] }
 0x1d3   : > { %2883 = vmatprep.subr.bf16.mxu1 %v2694_v20  ;;  %v2696_v38 = vpack.c.bf16 %v2616_v43, %v2612_v25  ;;  %v2698_v41 = vpack.c.bf16 %v2618_v7, %v2614_v26  ;;  %v2611_v32 = vmul.f32 %v4732_v29, %v4413_v62  ;;  %v2626_v55 = vmul.f32 %v4760_v37, %v4630_v35 }
 0x1d4   : > { %v2613_v49 = vmul.f32 %v4736_v5, %v4431_v14  ;;  %v2620_v8 = vmul.f32 %v4756_v53, %v4416_v10  ;;  %v2622_v12 = vmul.f32 %v4760_v37, %v4435_v17  ;;  %v2623_v63 = vmul.f32 %v4764_v58, %v4438_v0 }
 0x1d5   : > { %2841 = vmatpush1.bf16.msra.mxu0 %v2691_v48  ;;  %v2695_v47 = vpack.c.bf16 %v2615_v34, %v2611_v32  ;;  %v2625_v56 = vmul.f32 %v4768_v16, %v4503_v44  ;;  %v2632_v61 = vmul.f32 %v4788_v22, %v4441_v42  ;;  %v2619_v53 = vmul.f32 %v4764_v58, %v4413_v62 }
 0x1d6   : > { %2884 = vmatpush1.bf16.msra.mxu1 %v2693_v23  ;;  %2842 = vmatprep.subr.bf16.mxu0 %v2696_v38  ;;  %v2697_v29 = vpack.c.bf16 %v2617_v1, %v2613_v49  ;;  %v2700_v21 = vpack.c.bf16 %v2624_v50, %v2620_v8  ;;  %v2702_v5 = vpack.c.bf16 %v2626_v55, %v2622_v12 }
 0x1d7   : > { %2885 = vmatprep.subr.bf16.mxu1 %v2698_v41  ;;  %v2634_v2 = vmul.f32 %v4792_v6, %v4630_v35  ;;  %v2621_v37 = vmul.f32 %v4768_v16, %v4431_v14  ;;  %v2628_v52 = vmul.f32 %v4788_v22, %v4416_v10  ;;  %v2699_v9 = vpack.c.bf16 %v2623_v63, %v2619_v53 }
 0x1d8   : > { %v2630_v60 = vmul.f32 %v4792_v6, %v4435_v17  ;;  %v2631_v30 = vmul.f32 %v4796_v59, %v4438_v0  ;;  %v2633_v51 = vmul.f32 %v4804_v13, %v4503_v44  ;;  %v2640_v4 = vmul.f32 %v4820_v27, %v4441_v42 }
 0x1d9   : > { %2843 = vmatpush1.bf16.msra.mxu0 %v2695_v47  ;;  %v2701_v58 = vpack.c.bf16 %v2625_v56, %v2621_v37  ;;  %v2704_v45 = vpack.c.bf16 %v2632_v61, %v2628_v52  ;;  %v2627_v22 = vmul.f32 %v4796_v59, %v4413_v62  ;;  %v2642_v54 = vmul.f32 %v5173_v36, %v4630_v35 }
 0x1da   : > { %2886 = vmatpush1.bf16.msra.mxu1 %v2697_v29  ;;  %2844 = vmatprep.subr.bf16.mxu0 %v2700_v21  ;;  %v2706_v16 = vpack.c.bf16 %v2634_v2, %v2630_v60  ;;  %v2629_v6 = vmul.f32 %v4804_v13, %v4431_v14  ;;  %v2636_v28 = vmul.f32 %v4820_v27, %v4416_v10  ;;  %v5175_v29 = vld [vmem:[#allocation4_spill] sm:$0xff] }
 0x1db   : > { %2887 = vmatprep.subr.bf16.mxu1 %v2702_v5  ;;  %v2703_v40 = vpack.c.bf16 %v2631_v30, %v2627_v22  ;;  %v2638_v39 = vmul.f32 %v5173_v36, %v4435_v17  ;;  %v2639_v31 = vmul.f32 %v5174_v3, %v4438_v0  ;;  %v2641_v43 = vmul.f32 %v4832_v15, %v4503_v44 }
 0x1dc   : > { %v2705_v59 = vpack.c.bf16 %v2633_v51, %v2629_v6  ;;  %v2708_v33 = vpack.c.bf16 %v2640_v4, %v2636_v28  ;;  %v2648_v20 = vmul.f32 %v4836_v24, %v4441_v42  ;;  %v2635_v27 = vmul.f32 %v5174_v3, %v4413_v62 }
 0x1dd   : > { %2845 = vmatpush1.bf16.msra.mxu0 %v2699_v9  ;;  %v2710_v13 = vpack.c.bf16 %v2642_v54, %v2638_v39  ;;  %v2650_v19 = vmul.f32 %v4860_v46, %v4630_v35  ;;  %v2637_v7 = vmul.f32 %v4832_v15, %v4431_v14  ;;  %v2644_v11 = vmul.f32 %v4836_v24, %v4416_v10 }
 0x1de   : > { %2888 = vmatpush1.bf16.msra.mxu1 %v2701_v58  ;;  %2846 = vmatprep.subr.bf16.mxu0 %v2704_v45  ;;  %v2707_v25 = vpack.c.bf16 %v2639_v31, %v2635_v27  ;;  %v2646_v42 = vmul.f32 %v4860_v46, %v4435_v17  ;;  %v2647_v48 = vmul.f32 %v4864_v18, %v4438_v0  ;;  %v3334_v0 = vld [vmem:[%s5064_s7] ss:$8 sps:$4 sm:$0x3f]  }
 0x1df   : > { %2889 = vmatprep.subr.bf16.mxu1 %v2706_v16  ;;  %v2709_v26 = vpack.c.bf16 %v2641_v43, %v2637_v7  ;;  %v2712_v34 = vpack.c.bf16 %v2648_v20, %v2644_v11  ;;  %v2649_v35 = vmul.f32 %v4868_v57, %v4503_v44  ;;  %v2643_v15 = vmul.f32 %v4864_v18, %v4413_v62 }
 0x1e0   : > { %v2714_v23 = vpack.c.bf16 %v2650_v19, %v2646_v42  ;;  %v2645_v10 = vmul.f32 %v4868_v57, %v4431_v14  ;;  %v3400_v14 = vmov 1966171168  }
 0x1e1   : > { %2847 = vmatpush1.bf16.msra.mxu0 %v2703_v40  ;;  %v2711_v17 = vpack.c.bf16 %v2647_v48, %v2643_v15  ;;  %v2950_v57 = vunpack.c.l.s4 %v3400_v14 }
 0x1e2   : > { %2890 = vmatpush1.bf16.msra.mxu1 %v2705_v59  ;;  %2848 = vmatprep.subr.bf16.mxu0 %v2708_v33  ;;  %v2713_v46 = vpack.c.bf16 %v2649_v35, %v2645_v10 }
 0x1e3   : > { %2891 = vmatprep.subr.bf16.mxu1 %v2710_v13  ;;  %v2951_v32 = vunpack.c.0.s8 %v2950_v57 }
 0x1e5   : > { %2849 = vmatpush1.bf16.msra.mxu0 %v2707_v25  ;;  %v5014_v21 = vsub.s32 %v2951_v32, %v5175_v29 }
 0x1e6   : > { %2892 = vmatpush1.bf16.msra.mxu1 %v2709_v26  ;;  %2850 = vmatprep.subr.bf16.mxu0 %v2712_v34 }
 0x1e7   : > { %2893 = vmatprep.subr.bf16.mxu1 %v2714_v23 }
 0x1e9   : > { %2851 = vmatpush1.bf16.msra.mxu0 %v2711_v17 }
 0x1ea   : > { %2894 = vmatpush1.bf16.msra.mxu1 %v2713_v46 }
 0x1ec   : > { %2853 = vmatmul.mubr.bf16.vlgmr.msra.gmra.mrb[4].mxu0 %v3334_v0 }
 0x1ed   : > { %2896 = vmatmul.mubr.bf16.vlgmr.msra.gmra.mrb[4].mxu1 %v3334_v0 }
 0x27a   : > { %v2758_v44 = vpop.f32.mrb[0].mxu0 }
 0x27b   : > { %v2760_v24 = vpop.f32.mrb[1].mxu0 }
 0x27c   : > { %v2762_v38 = vpop.f32.mrb[2].mxu0 }
 0x27d   : > { %v2801_v62 = vpop.f32.mrb[0].mxu1  ;;  %v2764_v18 = vpop.f32.mrb[3].mxu0 }
 0x27e   : > { %v2803_v1 = vpop.f32.mrb[1].mxu1 }
 0x27f   : > { %v2805_v50 = vpop.f32.mrb[2].mxu1 }
 0x280   : > { %v2807_v41 = vpop.f32.mrb[3].mxu1 }
 0x2bf   : > { %v2854_v55 = vpop.f32.mrb[4].mxu0 }
 0x2c0   : > { %v2906_v49 = vmul.f32 %v2854_v55, %v2758_v44  ;;  %v2897_v8 = vpop.f32.mrb[4].mxu1  ;;  %v2856_v47 = vpop.f32.mrb[5].mxu0 }
 0x2c1   : > { %v2908_v12 = vmul.f32 %v2897_v8, %v2801_v62  ;;  %v2907_v63 = vmul.f32 %v2856_v47, %v2760_v24  ;;  %v2899_v56 = vpop.f32.mrb[5].mxu1  ;;  %v2858_v61 = vpop.f32.mrb[6].mxu0 }
 0x2c2   : > { %v2915_v5 = vsel %vm2914_vm4, %v2906_v49, 0.0  ;;  %v2986_v53 = vrot.slane %v2906_v49, 6  ;;  %v2909_v2 = vmul.f32 %v2899_v56, %v2803_v1  ;;  %v2910_v37 = vmul.f32 %v2858_v61, %v2762_v38  ;;  %v2901_v52 = vpop.f32.mrb[6].mxu1  ;;  %v2860_v9 = vpop.f32.mrb[7].mxu0 }
 0x2c3   : > { %v2916_v60 = vrot.slane %v2915_v5, 4  ;;  %v2929_v30 = vsel %vm2914_vm4, %v2908_v12, 0.0  ;;  %v2992_v58 = vrot.slane %v2908_v12, 6  ;;  %v2922_v45 = vsel %vm2914_vm4, %v2907_v63, 0.0  ;;  %v2903_v51 = vpop.f32.mrb[7].mxu1 }
 0x2c4   : > { %v2930_v4 = vrot.slane %v2929_v30, 4  ;;  %v2923_v16 = vrot.slane %v2922_v45, 4  ;;  %v2989_v22 = vrot.slane %v2907_v63, 6  ;;  %v2936_v36 = vsel %vm2914_vm4, %v2909_v2, 0.0 }
 0x2c5   : > { %v2917_v54 = vadd.f32 %v2916_v60, %v2915_v5  ;;  %v2937_v6 = vrot.slane %v2936_v36, 4  ;;  %v2995_v28 = vrot.slane %v2909_v2, 6  ;;  %v2987_v40 = vrot.slane %v2910_v37, 6 }
 0x2c6   : > { %v2931_v39 = vadd.f32 %v2930_v4, %v2929_v30  ;;  %v2924_v3 = vadd.f32 %v2923_v16, %v2922_v45  ;;  %v2912_v31 = vmul.f32 %v2901_v52, %v2805_v50  ;;  %v2911_v59 = vmul.f32 %v2860_v9, %v2764_v18 }
 0x2c7   : > { %v2918_v33 = vrot.slane %v2917_v54, 2  ;;  %v2938_v43 = vadd.f32 %v2937_v6, %v2936_v36  ;;  %v2988_v20 = vsel %vm2985_vm15, %v2986_v53, %v2987_v40  ;;  %v2913_v13 = vmul.f32 %v2903_v51, %v2807_v41 }
 0x2c8   : > { %v2932_v27 = vrot.slane %v2931_v39, 2  ;;  %v2925_v19 = vrot.slane %v2924_v3, 2  ;;  %v3002_v7 = vsel %vm2914_vm4, %v2988_v20, 0.0  ;;  %v2993_v11 = vrot.slane %v2912_v31, 6 }
 0x2c9   : > { %v2919_v25 = vadd.f32 %v2918_v33, %v2917_v54  ;;  %v2939_v42 = vrot.slane %v2938_v43, 2  ;;  %v3003_v48 = vrot.slane %v3002_v7, 4  ;;  %v2990_v26 = vrot.slane %v2911_v59, 6 }
 0x2ca   : > { %v2933_v34 = vadd.f32 %v2932_v27, %v2931_v39  ;;  %v2926_v35 = vadd.f32 %v2925_v19, %v2924_v3  ;;  %v2994_v23 = vsel %vm2985_vm15, %v2992_v58, %v2993_v11  ;;  %v2996_v15 = vrot.slane %v2913_v13, 6 }
 0x2cb   : > { %v2920_v10 = vrot.slane %v2919_v25, 1  ;;  %v2940_v17 = vadd.f32 %v2939_v42, %v2938_v43  ;;  %v3004_v46 = vadd.f32 %v3003_v48, %v3002_v7  ;;  %v3016_v0 = vsel %vm2914_vm4, %v2994_v23, 0.0 }
 0x2cc   : > { %v2934_v44 = vrot.slane %v2933_v34, 1  ;;  %v2927_v24 = vrot.slane %v2926_v35, 1  ;;  %v3017_v38 = vrot.slane %v3016_v0, 4  ;;  %v2991_v62 = vsel %vm2985_vm15, %v2989_v22, %v2990_v26 }
 0x2cd   : > { %v2921_v18 = vadd.f32 %v2920_v10, %v2919_v25  ;;  %v2941_v1 = vrot.slane %v2940_v17, 1  ;;  %v3005_v50 = vrot.slane %v3004_v46, 2  ;;  %v3009_v41 = vsel %vm2914_vm4, %v2991_v62, 0.0 }
 0x2ce   : > { %v2935_v14 = vadd.f32 %v2934_v44, %v2933_v34  ;;  %v2928_v57 = vadd.f32 %v2927_v24, %v2926_v35  ;;  %v3018_v32 = vadd.f32 %v3017_v38, %v3016_v0  ;;  %v3010_v55 = vrot.slane %v3009_v41, 4 }
 0x2cf   : > { %v2942_v49 = vadd.f32 %v2941_v1, %v2940_v17  ;;  %v3006_v8 = vadd.f32 %v3005_v50, %v3004_v46  ;;  %v2997_v47 = vsel %vm2985_vm15, %v2995_v28, %v2996_v15  ;;  %v5176_v4 = vlaneseq }
 0x2d0   : > { %v2947_v12 = vcombine.low %v2921_v18, %v2928_v57  ;;  %v3019_v63 = vrot.slane %v3018_v32, 2  ;;  %v3011_v29 = vadd.f32 %v3010_v55, %v3009_v41  ;;  %v3023_v56 = vsel %vm2914_vm4, %v2997_v47, 0.0 }
 0x2d1   : > { %v2948_v61 = vcombine.low %v2935_v14, %v2942_v49  ;;  %v3024_v5 = vrot.slane %v3023_v56, 4  ;;  %v3007_v2 = vrot.slane %v3006_v8, 1  ;;  %vm5035_vm8 = vcmp.lt.s32.totalorder %v5176_v4, 512 }
 0x2d2   : > { %v2955_v53 = vrot.slane %v2947_v12, %v5014_v21  ;;  %v3020_v37 = vadd.f32 %v3019_v63, %v3018_v32  ;;  %v3012_v52 = vrot.slane %v3011_v29, 2 }
 0x2d3   : > { %v2962_v9 = vrot.slane %v2948_v61, %v5014_v21  ;;  %v3025_v60 = vadd.f32 %v3024_v5, %v3023_v56  ;;  %v3008_v22 = vadd.f32 %v3007_v2, %v3006_v8 }
 0x2d4   : > { %v3013_v30 = vadd.f32 %v3012_v52, %v3011_v29  ;;  %v3021_v45 = vrot.slane %v3020_v37, 1 }
 0x2d5   : > { %v2963_v58 = vcombine.low %v2955_v53, %v2962_v9  ;;  %v3026_v51 = vrot.slane %v3025_v60, 2 }
 0x2d6   : > { %v3014_v36 = vrot.slane %v3013_v30, 1  ;;  %v3022_v40 = vadd.f32 %v3021_v45, %v3020_v37 }
 0x2d7   : > { %v2970_v54 = vrot.slane %v2963_v58, %v5014_v21  ;;  %v3027_v6 = vadd.f32 %v3026_v51, %v3025_v60 }
 0x2d8   : > { %v3015_v28 = vadd.f32 %v3014_v36, %v3013_v30 }
 0x2d9   : > { %2976 = vst.msk [vmem:[%s458_s20] ss:$2 sm:$0xf] %vm5035_vm8, %v2970_v54  ;;  %v3028_v39 = vrot.slane %v3027_v6, 1 }
 0x2da   : > { %v3034_v3 = vcombine.low %v3008_v22, %v3015_v28 }
 0x2db   : > { %v3029_v31 = vadd.f32 %v3028_v39, %v3027_v6 }
 0x2dc   : > { %v3042_v59 = vrot.slane %v3034_v3, %v5014_v21 }
 0x2dd   : > { %v3035_v33 = vcombine.low %v3022_v40, %v3029_v31 }
 0x2df   : > { %v3049_v43 = vrot.slane %v3035_v33, %v5014_v21 }
 0x2e1   : > { %v3050_v20 = vcombine.low %v3042_v59, %v3049_v43 }
 0x2e3   : > { %v3057_v13 = vrot.slane %v3050_v20, %v5014_v21 }
 0x2e5   : > { %3263 = vst.msk [vmem:[%s458_s20 + $0x1] ss:$2 sm:$0xf] %vm5035_vm8, %v3057_v13 }
 0x2e6 PF: > { %p15_p9 = scmp.ge.s32.totalorder %s3463_s9, 4   ;;  %s5179_s27 = smov %s3387_s28 }
 0x2e7   : > { %s5180_s28 = smov %s3472_s12  ;;  %s5181_s29 = smov %s3463_s9 }
 0x2e8   :  { %17 = sbr.rel (!%p15_p9) target bundleno = 2 (0x2), region = 151 }

</bundles_post_ra>
